<compile_context>
chip_gen: v7x
topology: tpu7x:2x2x1
jax: 0.10.0
libtpu: 0.0.40
codegen_flags: <defaults>
</compile_context>

<pallas_src>
import functools
import math

import jax
import jax.numpy as jnp
import numpy as np
from jax.experimental import pallas as pl
from jax.experimental.pallas import tpu as pltpu

LN_EPS = 1e-5  # PyTorch nn.LayerNorm default


# ---------------------------------------------------------------------------
# small math helpers (usable both inside kernels and in the pure-JAX reference)
# ---------------------------------------------------------------------------
def _layernorm(x, w, b):
    # x: (T, C) f32, w/b: (1, C) f32
    mu = jnp.mean(x, axis=-1, keepdims=True)
    xc = x - mu
    var = jnp.mean(xc * xc, axis=-1, keepdims=True)
    inv = jax.lax.rsqrt(var + LN_EPS)
    return xc * inv * w + b


def _gelu_tanh(x):
    c = math.sqrt(2.0 / math.pi)
    return 0.5 * x * (1.0 + jnp.tanh(c * (x + 0.044715 * x * x * x)))


# ---------------------------------------------------------------------------
# Pallas kernels
# ---------------------------------------------------------------------------
_DN_NT = (((1,), (1,)), ((), ()))  # contract last dims of both operands (A @ B.T)


def _stack_kernel(n_head,
                  x_ref, ln1w_ref, ln1b_ref,
                  wq_ref, bq_ref, wk_ref, bk_ref, wv_ref, bv_ref,
                  wpr_ref, bpr_ref, ln2w_ref, ln2b_ref,
                  wfc_ref, bfc_ref, wpj_ref, bpj_ref,
                  lnfw_ref, lnfb_ref,
                  o_ref, res_ref, attn_ref):
    """All L transformer blocks (grid axis 1) for one sequence (grid axis 0).

    The f32 residual stream lives in `res_ref` (VMEM scratch) across the layer
    axis; ln_f is applied on the last layer and the bf16 result written out.
    """
    layer = pl.program_id(1)

    @pl.when(layer == 0)
    def _():
        res_ref[...] = x_ref[0]

    x = res_ref[...]                      # (T, C) f32 residual stream
    T, C = x.shape
    hd = C // n_head
    scale = 1.0 / math.sqrt(hd)

    # ---- attention branch (pre-LN) ----
    h = _layernorm(x, ln1w_ref[0], ln1b_ref[0]).astype(jnp.bfloat16)
    q = jnp.dot(h, wq_ref[0], preferred_element_type=jnp.float32) + bq_ref[0]
    k = jnp.dot(h, wk_ref[0], preferred_element_type=jnp.float32) + bk_ref[0]
    v = jnp.dot(h, wv_ref[0], preferred_element_type=jnp.float32) + bv_ref[0]

    row = jax.lax.broadcasted_iota(jnp.int32, (T, T), 0)
    col = jax.lax.broadcasted_iota(jnp.int32, (T, T), 1)
    causal = row >= col

    for hh in range(n_head):              # per-head output goes straight into
        sl = slice(hh * hd, (hh + 1) * hd)  # a VMEM scratch slice (no concat)
        qh = q[:, sl].astype(jnp.bfloat16)
        kh = k[:, sl].astype(jnp.bfloat16)
        vh = v[:, sl].astype(jnp.bfloat16)
        s = jax.lax.dot_general(qh, kh, _DN_NT,
                                preferred_element_type=jnp.float32) * scale
        s = jnp.where(causal, s, -1e30)
        m = jnp.max(s, axis=-1, keepdims=True)
        p = jnp.exp(s - m)
        denom = jnp.sum(p, axis=-1, keepdims=True)
        p = p * pl.reciprocal(denom, approx=True)     # divide on the EUP slot
        attn_ref[:, sl] = jnp.dot(p.astype(jnp.bfloat16), vh,
                                  preferred_element_type=jnp.float32)

    y = jnp.dot(attn_ref[...].astype(jnp.bfloat16), wpr_ref[0],
                preferred_element_type=jnp.float32) + bpr_ref[0]
    x = x + y

    # ---- MLP branch (pre-LN) ----
    h2 = _layernorm(x, ln2w_ref[0], ln2b_ref[0]).astype(jnp.bfloat16)
    f = jnp.dot(h2, wfc_ref[0], preferred_element_type=jnp.float32) + bfc_ref[0]
    f = _gelu_tanh(f).astype(jnp.bfloat16)
    f = jnp.dot(f, wpj_ref[0], preferred_element_type=jnp.float32) + bpj_ref[0]
    x = x + f

    res_ref[...] = x

    @pl.when(layer == pl.num_programs(1) - 1)
    def _():
        o_ref[0] = _layernorm(x, lnfw_ref[...], lnfb_ref[...]).astype(o_ref.dtype)


def _head_kernel(x_ref, wte_ref, o_ref):
    """Vocab-tiled (weight-tied) lm_head: logits_tile = h @ wte_tile.T."""
    h = x_ref[0]                          # (T, C) bf16, already ln_f-normalized
    w = wte_ref[...]                      # (TV, C) bf16 (untransposed wte tile)
    o_ref[0] = jax.lax.dot_general(h, w, _DN_NT,
                                   preferred_element_type=jnp.float32)


# ---------------------------------------------------------------------------
# wrappers around pallas_call
# ---------------------------------------------------------------------------
_STACK_PARAM_ORDER = ("ln1w", "ln1b", "wq", "bq", "wk", "bk", "wv", "bv",
                      "wpr", "bpr", "ln2w", "ln2b", "wfc", "bfc", "wpj", "bpj")

_VMEM_LIMIT = 64 * 1024 * 1024


def run_stack(x, prep, n_head):
    B, T, C = x.shape
    stacked = [prep[k] for k in _STACK_PARAM_ORDER]
    L = stacked[0].shape[0]

    def layer_spec(a):       # (L, r, c) -> one layer's (1, r, c) block
        return pl.BlockSpec((1,) + a.shape[1:], lambda b, l: (l, 0, 0))

    def full_spec(a):        # small (1, C) params, shared by all grid steps
        return pl.BlockSpec(a.shape, lambda b, l: (0, 0))

    return pl.pallas_call(
        functools.partial(_stack_kernel, n_head),
        out_shape=jax.ShapeDtypeStruct((B, T, C), jnp.bfloat16),
        grid=(B, L),
        in_specs=[pl.BlockSpec((1, T, C), lambda b, l: (b, 0, 0))]
                 + [layer_spec(a) for a in stacked]
                 + [full_spec(prep["lnfw"]), full_spec(prep["lnfb"])],
        out_specs=pl.BlockSpec((1, T, C), lambda b, l: (b, 0, 0)),
        scratch_shapes=[pltpu.VMEM((T, C), jnp.float32),   # residual stream
                        pltpu.VMEM((T, C), jnp.float32)],  # attention heads
        compiler_params=pltpu.CompilerParams(
            dimension_semantics=("parallel", "arbitrary"),
            vmem_limit_bytes=_VMEM_LIMIT),
    )(x, *stacked, prep["lnfw"], prep["lnfb"])


def run_head(x_norm, wte_head, tv):
    B, T, C = x_norm.shape
    Vp = wte_head.shape[0]
    return pl.pallas_call(
        _head_kernel,
        out_shape=jax.ShapeDtypeStruct((B, T, Vp), jnp.float32),
        grid=(B, Vp // tv),
        in_specs=[pl.BlockSpec((1, T, C), lambda b, v: (b, 0, 0)),
                  pl.BlockSpec((tv, C), lambda b, v: (v, 0))],
        out_specs=pl.BlockSpec((1, T, tv), lambda b, v: (b, 0, v)),
        compiler_params=pltpu.CompilerParams(
            dimension_semantics=("parallel", "parallel"),
            vmem_limit_bytes=_VMEM_LIMIT),
    )(x_norm, wte_head)


def gpt_forward(prep, idx, n_head):
    """forward(idx) -> logits  (targets=None path of GPT.forward)."""
    B, T = idx.shape
    tok_emb = prep["wte"][idx]            # embedding gather stays in plain JAX
    pos_emb = prep["wpe"][:T]
    x = (tok_emb + pos_emb[None]).astype(jnp.float32)
    h = run_stack(x, prep, n_head)                        # (B, T, C) bf16, ln_f'd
    logits = run_head(h, prep["wte_head"], prep["head_tile"])
    return logits[:, :, :prep["vocab_size"]]
    # TODO(synk): cross-entropy loss (targets path) and generate() sampling are
    # host-level logic and are not implemented as Pallas kernels.


# ---------------------------------------------------------------------------
# deterministic parameter init (mirrors GPT._init_weights shapes / stds)
# ---------------------------------------------------------------------------
def init_params(key, cfg):
    C, V, L, BS = cfg["n_embd"], cfg["vocab_size"], cfg["n_layer"], cfg["block_size"]
    std = 0.02
    proj_std = 0.02 * (2 * L) ** -0.5     # NANOGPT_SCALE_INIT layers
    keys = iter(jax.random.split(key, 2 + 4 * L))

    def nrm(shape, s):
        return s * jax.random.normal(next(keys), shape, jnp.float32)

    wte = nrm((V, C), std)                # tied with lm_head
    wpe = nrm((BS, C), std)
    blocks = []
    for _ in range(L):
        blocks.append(dict(
            ln1w=jnp.ones((1, C), jnp.float32), ln1b=jnp.zeros((1, C), jnp.float32),
            wqkv=nrm((C, 3 * C), std),          bqkv=jnp.zeros((1, 3 * C), jnp.float32),
            wpr=nrm((C, C), proj_std),          bpr=jnp.zeros((1, C), jnp.float32),
            ln2w=jnp.ones((1, C), jnp.float32), ln2b=jnp.zeros((1, C), jnp.float32),
            wfc=nrm((C, 4 * C), std),           bfc=jnp.zeros((1, 4 * C), jnp.float32),
            wpj=nrm((4 * C, C), proj_std),      bpj=jnp.zeros((1, C), jnp.float32),
        ))
    return dict(wte=wte, wpe=wpe, blocks=blocks,
                lnfw=jnp.ones((1, C), jnp.float32),
                lnfb=jnp.zeros((1, C), jnp.float32))


def prepare_params(params, head_tile=None):
    """One-time repacking for the kernels: stack per-layer weights into (L,...)
    arrays, split qkv into wq/wk/wv, cast matmul weights to bf16, and build a
    vocab-padded bf16 copy of the tied lm_head weight (no runtime transpose)."""
    blocks = params["blocks"]
    V, C = params["wte"].shape
    bf16 = jnp.bfloat16

    def stack(k):
        return jnp.stack([b[k] for b in blocks], axis=0)

    wqkv = stack("wqkv")                  # (L, C, 3C) f32
    bqkv = stack("bqkv")                  # (L, 1, 3C) f32
    prep = dict(
        ln1w=stack("ln1w"), ln1b=stack("ln1b"),
        wq=wqkv[:, :, 0 * C:1 * C].astype(bf16), bq=bqkv[:, :, 0 * C:1 * C],
        wk=wqkv[:, :, 1 * C:2 * C].astype(bf16), bk=bqkv[:, :, 1 * C:2 * C],
        wv=wqkv[:, :, 2 * C:3 * C].astype(bf16), bv=bqkv[:, :, 2 * C:3 * C],
        wpr=stack("wpr").astype(bf16), bpr=stack("bpr"),
        ln2w=stack("ln2w"), ln2b=stack("ln2b"),
        wfc=stack("wfc").astype(bf16), bfc=stack("bfc"),
        wpj=stack("wpj").astype(bf16), bpj=stack("bpj"),
        lnfw=params["lnfw"], lnfb=params["lnfb"],
        wte=params["wte"], wpe=params["wpe"],
    )
    if head_tile is None:
        vp128 = ((V + 127) // 128) * 128
        head_tile = 128 if vp128 <= 1024 else 512   # lane-dense 128-multiple tiles
    Vp = ((V + head_tile - 1) // head_tile) * head_tile
    wte_head = jnp.pad(params["wte"], ((0, Vp - V), (0, 0))).astype(bf16)
    prep.update(wte_head=wte_head, head_tile=head_tile, vocab_size=V)
    return prep


# ---------------------------------------------------------------------------
# pure-JAX reference (f32, no Pallas) for correctness check
# ---------------------------------------------------------------------------
def ref_forward(params, idx, n_head):
    B, T = idx.shape
    x = params["wte"][idx] + params["wpe"][:T][None]
    C = x.shape[-1]
    hd = C // n_head
    scale = 1.0 / math.sqrt(hd)
    causal = jnp.arange(T)[:, None] >= jnp.arange(T)[None, :]

    def one_seq(xs, blk):
        h = _layernorm(xs, blk["ln1w"], blk["ln1b"])
        qkv = h @ blk["wqkv"] + blk["bqkv"]
        q, k, v = qkv[:, :C], qkv[:, C:2 * C], qkv[:, 2 * C:]
        outs = []
        for hh in range(n_head):
            qh, kh, vh = (t[:, hh * hd:(hh + 1) * hd] for t in (q, k, v))
            s = (qh @ kh.T) * scale
            s = jnp.where(causal, s, -1e30)
            p = jax.nn.softmax(s, axis=-1)
            outs.append(p @ vh)
        y = jnp.concatenate(outs, axis=-1) @ blk["wpr"] + blk["bpr"]
        xs = xs + y
        h2 = _layernorm(xs, blk["ln2w"], blk["ln2b"])
        f = _gelu_tanh(h2 @ blk["wfc"] + blk["bfc"]) @ blk["wpj"] + blk["bpj"]
        return xs + f

    ys = []
    for b in range(B):
        xs = x[b]
        for blk in params["blocks"]:
            xs = one_seq(xs, blk)
        xs = _layernorm(xs, params["lnfw"], params["lnfb"])
        ys.append(xs @ params["wte"].T)
    return jnp.stack(ys, axis=0)


if __name__ == "__main__":
    cfg = dict(block_size=16, vocab_size=256, n_layer=2, n_head=2, n_embd=32)
    B, T = 2, 8

    key = jax.random.PRNGKey(0)
    pkey, ikey = jax.random.split(key)
    params = init_params(pkey, cfg)
    prep = prepare_params(params)
    idx = jax.random.randint(ikey, (B, T), 0, cfg["vocab_size"], dtype=jnp.int32)

    logits = jax.block_until_ready(gpt_forward(prep, idx, cfg["n_head"]))
    assert logits.shape == (B, T, cfg["vocab_size"])
    assert bool(jnp.all(jnp.isfinite(logits)))

    ref = jax.block_until_ready(ref_forward(params, idx, cfg["n_head"]))
    np.testing.assert_allclose(np.asarray(logits), np.asarray(ref),
                               atol=2e-2, rtol=2e-2)
    print("KERNEL_OK")
</pallas_src>

<mosaic_0001>
module attributes {stable_mosaic.version = 11 : i64} {
  func.func @_stack_kernel(%arg0: i32, %arg1: i32, %arg2: memref<1x8x32xf32, #tpu.memory_space<vmem>>, %arg3: memref<1x1x32xf32, #tpu.memory_space<vmem>>, %arg4: memref<1x1x32xf32, #tpu.memory_space<vmem>>, %arg5: memref<1x32x32xbf16, #tpu.memory_space<vmem>>, %arg6: memref<1x1x32xf32, #tpu.memory_space<vmem>>, %arg7: memref<1x32x32xbf16, #tpu.memory_space<vmem>>, %arg8: memref<1x1x32xf32, #tpu.memory_space<vmem>>, %arg9: memref<1x32x32xbf16, #tpu.memory_space<vmem>>, %arg10: memref<1x1x32xf32, #tpu.memory_space<vmem>>, %arg11: memref<1x32x32xbf16, #tpu.memory_space<vmem>>, %arg12: memref<1x1x32xf32, #tpu.memory_space<vmem>>, %arg13: memref<1x1x32xf32, #tpu.memory_space<vmem>>, %arg14: memref<1x1x32xf32, #tpu.memory_space<vmem>>, %arg15: memref<1x32x128xbf16, #tpu.memory_space<vmem>>, %arg16: memref<1x1x128xf32, #tpu.memory_space<vmem>>, %arg17: memref<1x128x32xbf16, #tpu.memory_space<vmem>>, %arg18: memref<1x1x32xf32, #tpu.memory_space<vmem>>, %arg19: memref<1x32xf32, #tpu.memory_space<vmem>>, %arg20: memref<1x32xf32, #tpu.memory_space<vmem>>, %arg21: memref<1x8x32xbf16, #tpu.memory_space<vmem>>, %arg22: memref<8x32xf32, #tpu.memory_space<vmem>>, %arg23: memref<8x32xf32, #tpu.memory_space<vmem>>) attributes {dimension_semantics = [#tpu.dimension_semantics<parallel>, #tpu.dimension_semantics<arbitrary>], iteration_bounds = array<i64: 2, 2>, scalar_prefetch = 0 : i64, scratch_operands = 2 : i64, tpu.core_type = #tpu.core_type<tc>, window_params = [{transform_indices = @transform_0, window_bounds = array<i64: 1, 8, 32>}, {transform_indices = @transform_1, window_bounds = array<i64: 1, 1, 32>}, {transform_indices = @transform_2, window_bounds = array<i64: 1, 1, 32>}, {transform_indices = @transform_3, window_bounds = array<i64: 1, 32, 32>}, {transform_indices = @transform_4, window_bounds = array<i64: 1, 1, 32>}, {transform_indices = @transform_5, window_bounds = array<i64: 1, 32, 32>}, {transform_indices = @transform_6, window_bounds = array<i64: 1, 1, 32>}, {transform_indices = @transform_7, window_bounds = array<i64: 1, 32, 32>}, {transform_indices = @transform_8, window_bounds = array<i64: 1, 1, 32>}, {transform_indices = @transform_9, window_bounds = array<i64: 1, 32, 32>}, {transform_indices = @transform_10, window_bounds = array<i64: 1, 1, 32>}, {transform_indices = @transform_11, window_bounds = array<i64: 1, 1, 32>}, {transform_indices = @transform_12, window_bounds = array<i64: 1, 1, 32>}, {transform_indices = @transform_13, window_bounds = array<i64: 1, 32, 128>}, {transform_indices = @transform_14, window_bounds = array<i64: 1, 1, 128>}, {transform_indices = @transform_15, window_bounds = array<i64: 1, 128, 32>}, {transform_indices = @transform_16, window_bounds = array<i64: 1, 1, 32>}, {pipeline_mode = #tpu.pipeline_mode<synchronous>, transform_indices = @transform_17, window_bounds = array<i64: 1, 32>}, {pipeline_mode = #tpu.pipeline_mode<synchronous>, transform_indices = @transform_18, window_bounds = array<i64: 1, 32>}, {transform_indices = @transform_19, window_bounds = array<i64: 1, 8, 32>}]} {
    %c0_i32 = arith.constant 0 : i32
    %0 = arith.cmpi eq, %arg1, %c0_i32 : i32
    %1 = arith.extui %0 : i1 to i32
    %c0_i32_0 = arith.constant 0 : i32
    %2 = arith.cmpi ne, %1, %c0_i32_0 : i32
    scf.if %2 {
      %c0_89 = arith.constant 0 : index
      %c0_90 = arith.constant 0 : index
      %c0_91 = arith.constant 0 : index
      %169 = vector.load %arg2[%c0_89, %c0_90, %c0_91] : memref<1x8x32xf32, #tpu.memory_space<vmem>>, vector<1x8x32xf32>
      %170 = vector.shape_cast %169 : vector<1x8x32xf32> to vector<8x32xf32>
      %c0_92 = arith.constant 0 : index
      %c0_93 = arith.constant 0 : index
      %171 = vector.load %arg22[%c0_92, %c0_93] : memref<8x32xf32, #tpu.memory_space<vmem>>, vector<8x32xf32>
      tpu.vector_store %arg22[%c0_92, %c0_93], %170 {strides = array<i32>} : memref<8x32xf32, #tpu.memory_space<vmem>>, vector<8x32xf32>,
    } else {
    }
    %c0 = arith.constant 0 : index
    %c0_1 = arith.constant 0 : index
    %3 = vector.load %arg22[%c0, %c0_1] : memref<8x32xf32, #tpu.memory_space<vmem>>, vector<8x32xf32>
    %c0_2 = arith.constant 0 : index
    %c0_3 = arith.constant 0 : index
    %c0_4 = arith.constant 0 : index
    %4 = vector.load %arg3[%c0_2, %c0_3, %c0_4] : memref<1x1x32xf32, #tpu.memory_space<vmem>>, vector<1x1x32xf32>
    %5 = vector.shape_cast %4 : vector<1x1x32xf32> to vector<1x32xf32>
    %c0_5 = arith.constant 0 : index
    %c0_6 = arith.constant 0 : index
    %c0_7 = arith.constant 0 : index
    %6 = vector.load %arg4[%c0_5, %c0_6, %c0_7] : memref<1x1x32xf32, #tpu.memory_space<vmem>>, vector<1x1x32xf32>
    %7 = vector.shape_cast %6 : vector<1x1x32xf32> to vector<1x32xf32>
    %cst = arith.constant dense<0.000000e+00> : vector<8xf32>
    %8 = vector.multi_reduction <add>, %3, %cst [1] : vector<8x32xf32> to vector<8xf32>
    %9 = vector.shape_cast %8 : vector<8xf32> to vector<8x1xf32>
    %cst_8 = arith.constant 3.200000e+01 : f32
    %10 = vector.broadcast %cst_8 : f32 to vector<8x1xf32>
    %11 = arith.divf %9, %10 : vector<8x1xf32>
    %12 = vector.broadcast %11 : vector<8x1xf32> to vector<8x32xf32>
    %13 = arith.subf %3, %12 : vector<8x32xf32>
    %14 = arith.mulf %13, %13 : vector<8x32xf32>
    %cst_9 = arith.constant dense<0.000000e+00> : vector<8xf32>
    %15 = vector.multi_reduction <add>, %14, %cst_9 [1] : vector<8x32xf32> to vector<8xf32>
    %16 = vector.shape_cast %15 : vector<8xf32> to vector<8x1xf32>
    %cst_10 = arith.constant 3.200000e+01 : f32
    %17 = vector.broadcast %cst_10 : f32 to vector<8x1xf32>
    %18 = arith.divf %16, %17 : vector<8x1xf32>
    %cst_11 = arith.constant 9.99999974E-6 : f32
    %19 = vector.broadcast %cst_11 : f32 to vector<8x1xf32>
    %20 = arith.addf %18, %19 : vector<8x1xf32>
    %21 = math.rsqrt %20 : vector<8x1xf32>
    %22 = vector.broadcast %21 : vector<8x1xf32> to vector<8x32xf32>
    %23 = arith.mulf %13, %22 : vector<8x32xf32>
    %24 = vector.broadcast %5 : vector<1x32xf32> to vector<8x32xf32>
    %25 = arith.mulf %23, %24 : vector<8x32xf32>
    %26 = vector.broadcast %7 : vector<1x32xf32> to vector<8x32xf32>
    %27 = arith.addf %25, %26 : vector<8x32xf32>
    %28 = arith.truncf %27 : vector<8x32xf32> to vector<8x32xbf16>
    %c0_12 = arith.constant 0 : index
    %c0_13 = arith.constant 0 : index
    %c0_14 = arith.constant 0 : index
    %29 = vector.load %arg5[%c0_12, %c0_13, %c0_14] : memref<1x32x32xbf16, #tpu.memory_space<vmem>>, vector<1x32x32xbf16>
    %30 = vector.shape_cast %29 : vector<1x32x32xbf16> to vector<32x32xbf16>
    %cst_15 = arith.constant dense<0.000000e+00> : vector<8x32xf32>
    %31 = tpu.matmul %28, %30, %cst_15 {dimension_numbers = #tpu.dot_dimension_numbers<[1], [0], [0], [1], [0, 0, 1, 1], [], []>} : vector<8x32xbf16>, vector<32x32xbf16>, vector<8x32xf32> -> vector<8x32xf32>
    %c0_16 = arith.constant 0 : index
    %c0_17 = arith.constant 0 : index
    %c0_18 = arith.constant 0 : index
    %32 = vector.load %arg6[%c0_16, %c0_17, %c0_18] : memref<1x1x32xf32, #tpu.memory_space<vmem>>, vector<1x1x32xf32>
    %33 = vector.shape_cast %32 : vector<1x1x32xf32> to vector<1x32xf32>
    %34 = vector.broadcast %33 : vector<1x32xf32> to vector<8x32xf32>
    %35 = arith.addf %31, %34 : vector<8x32xf32>
    %c0_19 = arith.constant 0 : index
    %c0_20 = arith.constant 0 : index
    %c0_21 = arith.constant 0 : index
    %36 = vector.load %arg7[%c0_19, %c0_20, %c0_21] : memref<1x32x32xbf16, #tpu.memory_space<vmem>>, vector<1x32x32xbf16>
    %37 = vector.shape_cast %36 : vector<1x32x32xbf16> to vector<32x32xbf16>
    %cst_22 = arith.constant dense<0.000000e+00> : vector<8x32xf32>
    %38 = tpu.matmul %28, %37, %cst_22 {dimension_numbers = #tpu.dot_dimension_numbers<[1], [0], [0], [1], [0, 0, 1, 1], [], []>} : vector<8x32xbf16>, vector<32x32xbf16>, vector<8x32xf32> -> vector<8x32xf32>
    %c0_23 = arith.constant 0 : index
    %c0_24 = arith.constant 0 : index
    %c0_25 = arith.constant 0 : index
    %39 = vector.load %arg8[%c0_23, %c0_24, %c0_25] : memref<1x1x32xf32, #tpu.memory_space<vmem>>, vector<1x1x32xf32>
    %40 = vector.shape_cast %39 : vector<1x1x32xf32> to vector<1x32xf32>
    %41 = vector.broadcast %40 : vector<1x32xf32> to vector<8x32xf32>
    %42 = arith.addf %38, %41 : vector<8x32xf32>
    %c0_26 = arith.constant 0 : index
    %c0_27 = arith.constant 0 : index
    %c0_28 = arith.constant 0 : index
    %43 = vector.load %arg9[%c0_26, %c0_27, %c0_28] : memref<1x32x32xbf16, #tpu.memory_space<vmem>>, vector<1x32x32xbf16>
    %44 = vector.shape_cast %43 : vector<1x32x32xbf16> to vector<32x32xbf16>
    %cst_29 = arith.constant dense<0.000000e+00> : vector<8x32xf32>
    %45 = tpu.matmul %28, %44, %cst_29 {dimension_numbers = #tpu.dot_dimension_numbers<[1], [0], [0], [1], [0, 0, 1, 1], [], []>} : vector<8x32xbf16>, vector<32x32xbf16>, vector<8x32xf32> -> vector<8x32xf32>
    %c0_30 = arith.constant 0 : index
    %c0_31 = arith.constant 0 : index
    %c0_32 = arith.constant 0 : index
    %46 = vector.load %arg10[%c0_30, %c0_31, %c0_32] : memref<1x1x32xf32, #tpu.memory_space<vmem>>, vector<1x1x32xf32>
    %47 = vector.shape_cast %46 : vector<1x1x32xf32> to vector<1x32xf32>
    %48 = vector.broadcast %47 : vector<1x32xf32> to vector<8x32xf32>
    %49 = arith.addf %45, %48 : vector<8x32xf32>
    %50 = tpu.iota {dimensions = array<i32: 0>} : vector<8x8xi32>
    %51 = tpu.iota {dimensions = array<i32: 1>} : vector<8x8xi32>
    %52 = arith.cmpi sge, %50, %51 : vector<8x8xi32>
    %53 = vector.extract_strided_slice %35 {offsets = [0, 0], sizes = [8, 16], strides = [1, 1]} : vector<8x32xf32> to vector<8x16xf32>
    %54 = arith.truncf %53 : vector<8x16xf32> to vector<8x16xbf16>
    %55 = vector.extract_strided_slice %42 {offsets = [0, 0], sizes = [8, 16], strides = [1, 1]} : vector<8x32xf32> to vector<8x16xf32>
    %56 = arith.truncf %55 : vector<8x16xf32> to vector<8x16xbf16>
    %57 = vector.extract_strided_slice %49 {offsets = [0, 0], sizes = [8, 16], strides = [1, 1]} : vector<8x32xf32> to vector<8x16xf32>
    %58 = arith.truncf %57 : vector<8x16xf32> to vector<8x16xbf16>
    %cst_33 = arith.constant dense<0.000000e+00> : vector<8x8xf32>
    %59 = tpu.matmul %54, %56, %cst_33 {dimension_numbers = #tpu.dot_dimension_numbers<[1], [1], [0], [0], [0, 0, 1, 0], [], []>} : vector<8x16xbf16>, vector<8x16xbf16>, vector<8x8xf32> -> vector<8x8xf32>
    %cst_34 = arith.constant 2.500000e-01 : f32
    %60 = vector.broadcast %cst_34 : f32 to vector<8x8xf32>
    %61 = arith.mulf %59, %60 : vector<8x8xf32>
    %cst_35 = arith.constant -1.000000e+30 : f32
    %62 = vector.broadcast %cst_35 : f32 to vector<8x8xf32>
    %63 = arith.select %52, %61, %62 : vector<8x8xi1>, vector<8x8xf32>
    %cst_36 = arith.constant dense<0xFF800000> : vector<8xf32>
    %64 = vector.multi_reduction <maximumf>, %63, %cst_36 [1] : vector<8x8xf32> to vector<8xf32>
    %65 = vector.shape_cast %64 : vector<8xf32> to vector<8x1xf32>
    %66 = vector.broadcast %65 : vector<8x1xf32> to vector<8x8xf32>
    %67 = arith.subf %63, %66 : vector<8x8xf32>
    %68 = math.exp %67 : vector<8x8xf32>
    %cst_37 = arith.constant dense<0.000000e+00> : vector<8xf32>
    %69 = vector.multi_reduction <add>, %68, %cst_37 [1] : vector<8x8xf32> to vector<8xf32>
    %70 = vector.shape_cast %69 : vector<8xf32> to vector<8x1xf32>
    %71 = tpu.reciprocal %70 {approx = true} : vector<8x1xf32> -> vector<8x1xf32>
    %72 = vector.broadcast %71 : vector<8x1xf32> to vector<8x8xf32>
    %73 = arith.mulf %68, %72 : vector<8x8xf32>
    %74 = arith.truncf %73 : vector<8x8xf32> to vector<8x8xbf16>
    %cst_38 = arith.constant dense<0.000000e+00> : vector<8x16xf32>
    %75 = tpu.matmul %74, %58, %cst_38 {dimension_numbers = #tpu.dot_dimension_numbers<[1], [0], [0], [1], [0, 0, 1, 1], [], []>} : vector<8x8xbf16>, vector<8x16xbf16>, vector<8x16xf32> -> vector<8x16xf32>
    %c0_39 = arith.constant 0 : index
    %c0_40 = arith.constant 0 : index
    %76 = vector.load %arg23[%c0_39, %c0_40] : memref<8x32xf32, #tpu.memory_space<vmem>>, vector<8x16xf32>
    tpu.vector_store %arg23[%c0_39, %c0_40], %75 {strides = array<i32>} : memref<8x32xf32, #tpu.memory_space<vmem>>, vector<8x16xf32>,
    %77 = vector.extract_strided_slice %35 {offsets = [0, 16], sizes = [8, 16], strides = [1, 1]} : vector<8x32xf32> to vector<8x16xf32>
    %78 = arith.truncf %77 : vector<8x16xf32> to vector<8x16xbf16>
    %79 = vector.extract_strided_slice %42 {offsets = [0, 16], sizes = [8, 16], strides = [1, 1]} : vector<8x32xf32> to vector<8x16xf32>
    %80 = arith.truncf %79 : vector<8x16xf32> to vector<8x16xbf16>
    %81 = vector.extract_strided_slice %49 {offsets = [0, 16], sizes = [8, 16], strides = [1, 1]} : vector<8x32xf32> to vector<8x16xf32>
    %82 = arith.truncf %81 : vector<8x16xf32> to vector<8x16xbf16>
    %cst_41 = arith.constant dense<0.000000e+00> : vector<8x8xf32>
    %83 = tpu.matmul %78, %80, %cst_41 {dimension_numbers = #tpu.dot_dimension_numbers<[1], [1], [0], [0], [0, 0, 1, 0], [], []>} : vector<8x16xbf16>, vector<8x16xbf16>, vector<8x8xf32> -> vector<8x8xf32>
    %cst_42 = arith.constant 2.500000e-01 : f32
    %84 = vector.broadcast %cst_42 : f32 to vector<8x8xf32>
    %85 = arith.mulf %83, %84 : vector<8x8xf32>
    %cst_43 = arith.constant -1.000000e+30 : f32
    %86 = vector.broadcast %cst_43 : f32 to vector<8x8xf32>
    %87 = arith.select %52, %85, %86 : vector<8x8xi1>, vector<8x8xf32>
    %cst_44 = arith.constant dense<0xFF800000> : vector<8xf32>
    %88 = vector.multi_reduction <maximumf>, %87, %cst_44 [1] : vector<8x8xf32> to vector<8xf32>
    %89 = vector.shape_cast %88 : vector<8xf32> to vector<8x1xf32>
    %90 = vector.broadcast %89 : vector<8x1xf32> to vector<8x8xf32>
    %91 = arith.subf %87, %90 : vector<8x8xf32>
    %92 = math.exp %91 : vector<8x8xf32>
    %cst_45 = arith.constant dense<0.000000e+00> : vector<8xf32>
    %93 = vector.multi_reduction <add>, %92, %cst_45 [1] : vector<8x8xf32> to vector<8xf32>
    %94 = vector.shape_cast %93 : vector<8xf32> to vector<8x1xf32>
    %95 = tpu.reciprocal %94 {approx = true} : vector<8x1xf32> -> vector<8x1xf32>
    %96 = vector.broadcast %95 : vector<8x1xf32> to vector<8x8xf32>
    %97 = arith.mulf %92, %96 : vector<8x8xf32>
    %98 = arith.truncf %97 : vector<8x8xf32> to vector<8x8xbf16>
    %cst_46 = arith.constant dense<0.000000e+00> : vector<8x16xf32>
    %99 = tpu.matmul %98, %82, %cst_46 {dimension_numbers = #tpu.dot_dimension_numbers<[1], [0], [0], [1], [0, 0, 1, 1], [], []>} : vector<8x8xbf16>, vector<8x16xbf16>, vector<8x16xf32> -> vector<8x16xf32>
    %c0_47 = arith.constant 0 : index
    %c16 = arith.constant 16 : index
    %100 = vector.load %arg23[%c0_47, %c16] : memref<8x32xf32, #tpu.memory_space<vmem>>, vector<8x16xf32>
    tpu.vector_store %arg23[%c0_47, %c16], %99 {strides = array<i32>} : memref<8x32xf32, #tpu.memory_space<vmem>>, vector<8x16xf32>,
    %c0_48 = arith.constant 0 : index
    %c0_49 = arith.constant 0 : index
    %101 = vector.load %arg23[%c0_48, %c0_49] : memref<8x32xf32, #tpu.memory_space<vmem>>, vector<8x32xf32>
    %102 = arith.truncf %101 : vector<8x32xf32> to vector<8x32xbf16>
    %c0_50 = arith.constant 0 : index
    %c0_51 = arith.constant 0 : index
    %c0_52 = arith.constant 0 : index
    %103 = vector.load %arg11[%c0_50, %c0_51, %c0_52] : memref<1x32x32xbf16, #tpu.memory_space<vmem>>, vector<1x32x32xbf16>
    %104 = vector.shape_cast %103 : vector<1x32x32xbf16> to vector<32x32xbf16>
    %cst_53 = arith.constant dense<0.000000e+00> : vector<8x32xf32>
    %105 = tpu.matmul %102, %104, %cst_53 {dimension_numbers = #tpu.dot_dimension_numbers<[1], [0], [0], [1], [0, 0, 1, 1], [], []>} : vector<8x32xbf16>, vector<32x32xbf16>, vector<8x32xf32> -> vector<8x32xf32>
    %c0_54 = arith.constant 0 : index
    %c0_55 = arith.constant 0 : index
    %c0_56 = arith.constant 0 : index
    %106 = vector.load %arg12[%c0_54, %c0_55, %c0_56] : memref<1x1x32xf32, #tpu.memory_space<vmem>>, vector<1x1x32xf32>
    %107 = vector.shape_cast %106 : vector<1x1x32xf32> to vector<1x32xf32>
    %108 = vector.broadcast %107 : vector<1x32xf32> to vector<8x32xf32>
    %109 = arith.addf %105, %108 : vector<8x32xf32>
    %110 = arith.addf %3, %109 : vector<8x32xf32>
    %c0_57 = arith.constant 0 : index
    %c0_58 = arith.constant 0 : index
    %c0_59 = arith.constant 0 : index
    %111 = vector.load %arg13[%c0_57, %c0_58, %c0_59] : memref<1x1x32xf32, #tpu.memory_space<vmem>>, vector<1x1x32xf32>
    %112 = vector.shape_cast %111 : vector<1x1x32xf32> to vector<1x32xf32>
    %c0_60 = arith.constant 0 : index
    %c0_61 = arith.constant 0 : index
    %c0_62 = arith.constant 0 : index
    %113 = vector.load %arg14[%c0_60, %c0_61, %c0_62] : memref<1x1x32xf32, #tpu.memory_space<vmem>>, vector<1x1x32xf32>
    %114 = vector.shape_cast %113 : vector<1x1x32xf32> to vector<1x32xf32>
    %cst_63 = arith.constant dense<0.000000e+00> : vector<8xf32>
    %115 = vector.multi_reduction <add>, %110, %cst_63 [1] : vector<8x32xf32> to vector<8xf32>
    %116 = vector.shape_cast %115 : vector<8xf32> to vector<8x1xf32>
    %cst_64 = arith.constant 3.200000e+01 : f32
    %117 = vector.broadcast %cst_64 : f32 to vector<8x1xf32>
    %118 = arith.divf %116, %117 : vector<8x1xf32>
    %119 = vector.broadcast %118 : vector<8x1xf32> to vector<8x32xf32>
    %120 = arith.subf %110, %119 : vector<8x32xf32>
    %121 = arith.mulf %120, %120 : vector<8x32xf32>
    %cst_65 = arith.constant dense<0.000000e+00> : vector<8xf32>
    %122 = vector.multi_reduction <add>, %121, %cst_65 [1] : vector<8x32xf32> to vector<8xf32>
    %123 = vector.shape_cast %122 : vector<8xf32> to vector<8x1xf32>
    %cst_66 = arith.constant 3.200000e+01 : f32
    %124 = vector.broadcast %cst_66 : f32 to vector<8x1xf32>
    %125 = arith.divf %123, %124 : vector<8x1xf32>
    %cst_67 = arith.constant 9.99999974E-6 : f32
    %126 = vector.broadcast %cst_67 : f32 to vector<8x1xf32>
    %127 = arith.addf %125, %126 : vector<8x1xf32>
    %128 = math.rsqrt %127 : vector<8x1xf32>
    %129 = vector.broadcast %128 : vector<8x1xf32> to vector<8x32xf32>
    %130 = arith.mulf %120, %129 : vector<8x32xf32>
    %131 = vector.broadcast %112 : vector<1x32xf32> to vector<8x32xf32>
    %132 = arith.mulf %130, %131 : vector<8x32xf32>
    %133 = vector.broadcast %114 : vector<1x32xf32> to vector<8x32xf32>
    %134 = arith.addf %132, %133 : vector<8x32xf32>
    %135 = arith.truncf %134 : vector<8x32xf32> to vector<8x32xbf16>
    %c0_68 = arith.constant 0 : index
    %c0_69 = arith.constant 0 : index
    %c0_70 = arith.constant 0 : index
    %136 = vector.load %arg15[%c0_68, %c0_69, %c0_70] : memref<1x32x128xbf16, #tpu.memory_space<vmem>>, vector<1x32x128xbf16>
    %137 = vector.shape_cast %136 : vector<1x32x128xbf16> to vector<32x128xbf16>
    %cst_71 = arith.constant dense<0.000000e+00> : vector<8x128xf32>
    %138 = tpu.matmul %135, %137, %cst_71 {dimension_numbers = #tpu.dot_dimension_numbers<[1], [0], [0], [1], [0, 0, 1, 1], [], []>} : vector<8x32xbf16>, vector<32x128xbf16>, vector<8x128xf32> -> vector<8x128xf32>
    %c0_72 = arith.constant 0 : index
    %c0_73 = arith.constant 0 : index
    %c0_74 = arith.constant 0 : index
    %139 = vector.load %arg16[%c0_72, %c0_73, %c0_74] : memref<1x1x128xf32, #tpu.memory_space<vmem>>, vector<1x1x128xf32>
    %140 = vector.shape_cast %139 : vector<1x1x128xf32> to vector<1x128xf32>
    %141 = vector.broadcast %140 : vector<1x128xf32> to vector<8x128xf32>
    %142 = arith.addf %138, %141 : vector<8x128xf32>
    %cst_75 = arith.constant 5.000000e-01 : f32
    %143 = vector.broadcast %cst_75 : f32 to vector<8x128xf32>
    %144 = arith.mulf %143, %142 : vector<8x128xf32>
    %cst_76 = arith.constant 4.471500e-02 : f32
    %145 = vector.broadcast %cst_76 : f32 to vector<8x128xf32>
    %146 = arith.mulf %145, %142 : vector<8x128xf32>
    %147 = arith.mulf %146, %142 : vector<8x128xf32>
    %148 = arith.mulf %147, %142 : vector<8x128xf32>
    %149 = arith.addf %142, %148 : vector<8x128xf32>
    %cst_77 = arith.constant 0.797884583 : f32
    %150 = vector.broadcast %cst_77 : f32 to vector<8x128xf32>
    %151 = arith.mulf %150, %149 : vector<8x128xf32>
    %152 = math.tanh %151 : vector<8x128xf32>
    %cst_78 = arith.constant 1.000000e+00 : f32
    %153 = vector.broadcast %cst_78 : f32 to vector<8x128xf32>
    %154 = arith.addf %153, %152 : vector<8x128xf32>
    %155 = arith.mulf %144, %154 : vector<8x128xf32>
    %156 = arith.truncf %155 : vector<8x128xf32> to vector<8x128xbf16>
    %c0_79 = arith.constant 0 : index
    %c0_80 = arith.constant 0 : index
    %c0_81 = arith.constant 0 : index
    %157 = vector.load %arg17[%c0_79, %c0_80, %c0_81] : memref<1x128x32xbf16, #tpu.memory_space<vmem>>, vector<1x128x32xbf16>
    %158 = vector.shape_cast %157 : vector<1x128x32xbf16> to vector<128x32xbf16>
    %cst_82 = arith.constant dense<0.000000e+00> : vector<8x32xf32>
    %159 = tpu.matmul %156, %158, %cst_82 {dimension_numbers = #tpu.dot_dimension_numbers<[1], [0], [0], [1], [0, 0, 1, 1], [], []>} : vector<8x128xbf16>, vector<128x32xbf16>, vector<8x32xf32> -> vector<8x32xf32>
    %c0_83 = arith.constant 0 : index
    %c0_84 = arith.constant 0 : index
    %c0_85 = arith.constant 0 : index
    %160 = vector.load %arg18[%c0_83, %c0_84, %c0_85] : memref<1x1x32xf32, #tpu.memory_space<vmem>>, vector<1x1x32xf32>
    %161 = vector.shape_cast %160 : vector<1x1x32xf32> to vector<1x32xf32>
    %162 = vector.broadcast %161 : vector<1x32xf32> to vector<8x32xf32>
    %163 = arith.addf %159, %162 : vector<8x32xf32>
    %164 = arith.addf %110, %163 : vector<8x32xf32>
    %c0_86 = arith.constant 0 : index
    %c0_87 = arith.constant 0 : index
    %165 = vector.load %arg22[%c0_86, %c0_87] : memref<8x32xf32, #tpu.memory_space<vmem>>, vector<8x32xf32>
    tpu.vector_store %arg22[%c0_86, %c0_87], %164 {strides = array<i32>} : memref<8x32xf32, #tpu.memory_space<vmem>>, vector<8x32xf32>,
    %c1_i32 = arith.constant 1 : i32
    %166 = arith.cmpi eq, %arg1, %c1_i32 : i32
    %167 = arith.extui %166 : i1 to i32
    %c0_i32_88 = arith.constant 0 : i32
    %168 = arith.cmpi ne, %167, %c0_i32_88 : i32
    scf.if %168 {
      %c0_89 = arith.constant 0 : index
      %c0_90 = arith.constant 0 : index
      %169 = vector.load %arg19[%c0_89, %c0_90] : memref<1x32xf32, #tpu.memory_space<vmem>>, vector<1x32xf32>
      %c0_91 = arith.constant 0 : index
      %c0_92 = arith.constant 0 : index
      %170 = vector.load %arg20[%c0_91, %c0_92] : memref<1x32xf32, #tpu.memory_space<vmem>>, vector<1x32xf32>
      %cst_93 = arith.constant dense<0.000000e+00> : vector<8xf32>
      %171 = vector.multi_reduction <add>, %164, %cst_93 [1] : vector<8x32xf32> to vector<8xf32>
      %172 = vector.shape_cast %171 : vector<8xf32> to vector<8x1xf32>
      %cst_94 = arith.constant 3.200000e+01 : f32
      %173 = vector.broadcast %cst_94 : f32 to vector<8x1xf32>
      %174 = arith.divf %172, %173 : vector<8x1xf32>
      %175 = vector.broadcast %174 : vector<8x1xf32> to vector<8x32xf32>
      %176 = arith.subf %164, %175 : vector<8x32xf32>
      %177 = arith.mulf %176, %176 : vector<8x32xf32>
      %cst_95 = arith.constant dense<0.000000e+00> : vector<8xf32>
      %178 = vector.multi_reduction <add>, %177, %cst_95 [1] : vector<8x32xf32> to vector<8xf32>
      %179 = vector.shape_cast %178 : vector<8xf32> to vector<8x1xf32>
      %cst_96 = arith.constant 3.200000e+01 : f32
      %180 = vector.broadcast %cst_96 : f32 to vector<8x1xf32>
      %181 = arith.divf %179, %180 : vector<8x1xf32>
      %cst_97 = arith.constant 9.99999974E-6 : f32
      %182 = vector.broadcast %cst_97 : f32 to vector<8x1xf32>
      %183 = arith.addf %181, %182 : vector<8x1xf32>
      %184 = math.rsqrt %183 : vector<8x1xf32>
      %185 = vector.broadcast %184 : vector<8x1xf32> to vector<8x32xf32>
      %186 = arith.mulf %176, %185 : vector<8x32xf32>
      %187 = vector.broadcast %169 : vector<1x32xf32> to vector<8x32xf32>
      %188 = arith.mulf %186, %187 : vector<8x32xf32>
      %189 = vector.broadcast %170 : vector<1x32xf32> to vector<8x32xf32>
      %190 = arith.addf %188, %189 : vector<8x32xf32>
      %191 = arith.truncf %190 : vector<8x32xf32> to vector<8x32xbf16>
      %c0_98 = arith.constant 0 : index
      %c0_99 = arith.constant 0 : index
      %c0_100 = arith.constant 0 : index
      %192 = vector.load %arg21[%c0_98, %c0_99, %c0_100] : memref<1x8x32xbf16, #tpu.memory_space<vmem>>, vector<1x8x32xbf16>
      %193 = vector.shape_cast %192 : vector<1x8x32xbf16> to vector<8x32xbf16>
      %194 = vector.shape_cast %191 : vector<8x32xbf16> to vector<1x8x32xbf16>
      tpu.vector_store %arg21[%c0_98, %c0_99, %c0_100], %194 {strides = array<i32>} : memref<1x8x32xbf16, #tpu.memory_space<vmem>>, vector<1x8x32xbf16>,
    } else {
    }
    return
  }
  func.func @transform_0(%arg0: i32, %arg1: i32) -> (i32, i32, i32) {
    %c0_i32 = arith.constant 0 : i32
    %c0_i32_0 = arith.constant 0 : i32
    %c0_i32_1 = arith.constant 0 : i32
    return %arg0, %c0_i32, %c0_i32_0 : i32, i32, i32
  }
  func.func @transform_1(%arg0: i32, %arg1: i32) -> (i32, i32, i32) {
    %c0_i32 = arith.constant 0 : i32
    %c0_i32_0 = arith.constant 0 : i32
    %c0_i32_1 = arith.constant 0 : i32
    return %arg1, %c0_i32, %c0_i32_0 : i32, i32, i32
  }
  func.func @transform_2(%arg0: i32, %arg1: i32) -> (i32, i32, i32) {
    %c0_i32 = arith.constant 0 : i32
    %c0_i32_0 = arith.constant 0 : i32
    %c0_i32_1 = arith.constant 0 : i32
    return %arg1, %c0_i32, %c0_i32_0 : i32, i32, i32
  }
  func.func @transform_3(%arg0: i32, %arg1: i32) -> (i32, i32, i32) {
    %c0_i32 = arith.constant 0 : i32
    %c0_i32_0 = arith.constant 0 : i32
    %c0_i32_1 = arith.constant 0 : i32
    return %arg1, %c0_i32, %c0_i32_0 : i32, i32, i32
  }
  func.func @transform_4(%arg0: i32, %arg1: i32) -> (i32, i32, i32) {
    %c0_i32 = arith.constant 0 : i32
    %c0_i32_0 = arith.constant 0 : i32
    %c0_i32_1 = arith.constant 0 : i32
    return %arg1, %c0_i32, %c0_i32_0 : i32, i32, i32
  }
  func.func @transform_5(%arg0: i32, %arg1: i32) -> (i32, i32, i32) {
    %c0_i32 = arith.constant 0 : i32
    %c0_i32_0 = arith.constant 0 : i32
    %c0_i32_1 = arith.constant 0 : i32
    return %arg1, %c0_i32, %c0_i32_0 : i32, i32, i32
  }
  func.func @transform_6(%arg0: i32, %arg1: i32) -> (i32, i32, i32) {
    %c0_i32 = arith.constant 0 : i32
    %c0_i32_0 = arith.constant 0 : i32
    %c0_i32_1 = arith.constant 0 : i32
    return %arg1, %c0_i32, %c0_i32_0 : i32, i32, i32
  }
  func.func @transform_7(%arg0: i32, %arg1: i32) -> (i32, i32, i32) {
    %c0_i32 = arith.constant 0 : i32
    %c0_i32_0 = arith.constant 0 : i32
    %c0_i32_1 = arith.constant 0 : i32
    return %arg1, %c0_i32, %c0_i32_0 : i32, i32, i32
  }
  func.func @transform_8(%arg0: i32, %arg1: i32) -> (i32, i32, i32) {
    %c0_i32 = arith.constant 0 : i32
    %c0_i32_0 = arith.constant 0 : i32
    %c0_i32_1 = arith.constant 0 : i32
    return %arg1, %c0_i32, %c0_i32_0 : i32, i32, i32
  }
  func.func @transform_9(%arg0: i32, %arg1: i32) -> (i32, i32, i32) {
    %c0_i32 = arith.constant 0 : i32
    %c0_i32_0 = arith.constant 0 : i32
    %c0_i32_1 = arith.constant 0 : i32
    return %arg1, %c0_i32, %c0_i32_0 : i32, i32, i32
  }
  func.func @transform_10(%arg0: i32, %arg1: i32) -> (i32, i32, i32) {
    %c0_i32 = arith.constant 0 : i32
    %c0_i32_0 = arith.constant 0 : i32
    %c0_i32_1 = arith.constant 0 : i32
    return %arg1, %c0_i32, %c0_i32_0 : i32, i32, i32
  }
  func.func @transform_11(%arg0: i32, %arg1: i32) -> (i32, i32, i32) {
    %c0_i32 = arith.constant 0 : i32
    %c0_i32_0 = arith.constant 0 : i32
    %c0_i32_1 = arith.constant 0 : i32
    return %arg1, %c0_i32, %c0_i32_0 : i32, i32, i32
  }
  func.func @transform_12(%arg0: i32, %arg1: i32) -> (i32, i32, i32) {
    %c0_i32 = arith.constant 0 : i32
    %c0_i32_0 = arith.constant 0 : i32
    %c0_i32_1 = arith.constant 0 : i32
    return %arg1, %c0_i32, %c0_i32_0 : i32, i32, i32
  }
  func.func @transform_13(%arg0: i32, %arg1: i32) -> (i32, i32, i32) {
    %c0_i32 = arith.constant 0 : i32
    %c0_i32_0 = arith.constant 0 : i32
    %c0_i32_1 = arith.constant 0 : i32
    return %arg1, %c0_i32, %c0_i32_0 : i32, i32, i32
  }
  func.func @transform_14(%arg0: i32, %arg1: i32) -> (i32, i32, i32) {
    %c0_i32 = arith.constant 0 : i32
    %c0_i32_0 = arith.constant 0 : i32
    %c0_i32_1 = arith.constant 0 : i32
    return %arg1, %c0_i32, %c0_i32_0 : i32, i32, i32
  }
  func.func @transform_15(%arg0: i32, %arg1: i32) -> (i32, i32, i32) {
    %c0_i32 = arith.constant 0 : i32
    %c0_i32_0 = arith.constant 0 : i32
    %c0_i32_1 = arith.constant 0 : i32
    return %arg1, %c0_i32, %c0_i32_0 : i32, i32, i32
  }
  func.func @transform_16(%arg0: i32, %arg1: i32) -> (i32, i32, i32) {
    %c0_i32 = arith.constant 0 : i32
    %c0_i32_0 = arith.constant 0 : i32
    %c0_i32_1 = arith.constant 0 : i32
    return %arg1, %c0_i32, %c0_i32_0 : i32, i32, i32
  }
  func.func @transform_17(%arg0: i32, %arg1: i32) -> (i32, i32) {
    %c0_i32 = arith.constant 0 : i32
    %c0_i32_0 = arith.constant 0 : i32
    %c0_i32_1 = arith.constant 0 : i32
    return %c0_i32, %c0_i32_0 : i32, i32
  }
  func.func @transform_18(%arg0: i32, %arg1: i32) -> (i32, i32) {
    %c0_i32 = arith.constant 0 : i32
    %c0_i32_0 = arith.constant 0 : i32
    %c0_i32_1 = arith.constant 0 : i32
    return %c0_i32, %c0_i32_0 : i32, i32
  }
  func.func @transform_19(%arg0: i32, %arg1: i32) -> (i32, i32, i32) {
    %c0_i32 = arith.constant 0 : i32
    %c0_i32_0 = arith.constant 0 : i32
    %c0_i32_1 = arith.constant 0 : i32
    return %arg0, %c0_i32, %c0_i32_0 : i32, i32, i32
  }
}

</mosaic_0001>

<bundles_post_ra>
// kernel: tpu_custom_call.1
= control target key start
LH: loop header
LB: loop body
LE: loop exit
PB: predicated region body
PF: predicated region fallthrough
CT: control target
= control target key end

     0   :  { %s4659_s0 = inlined_call_operand.hbm [shape: f32[2,8,32], index: 0, kind: input, shape index: {}]   ;;  %s4660_s1 = inlined_call_operand.hbm [shape: f32[2,1,32], index: 1, kind: input, shape index: {}]   ;;  %s4661_s2 = inlined_call_operand.hbm [shape: f32[2,1,32], index: 2, kind: input, shape index: {}]   ;;  %s4662_s3 = inlined_call_operand.hbm [shape: bf16[2,32,32], index: 3, kind: input, shape index: {}]   ;;  %s4663_s4 = inlined_call_operand.hbm [shape: f32[2,1,32], index: 4, kind: input, shape index: {}]   ;;  %s4664_s5 = inlined_call_operand.hbm [shape: bf16[2,32,32], index: 5, kind: input, shape index: {}]   ;;  %s4665_s6 = inlined_call_operand.hbm [shape: f32[2,1,32], index: 6, kind: input, shape index: {}]   ;;  %s4666_s7 = inlined_call_operand.hbm [shape: bf16[2,32,32], index: 7, kind: input, shape index: {}]   ;;  %s4667_s8 = inlined_call_operand.hbm [shape: f32[2,1,32], index: 8, kind: input, shape index: {}]   ;;  %s4668_s9 = inlined_call_operand.hbm [shape: bf16[2,32,32], index: 9, kind: input, shape index: {}]   ;;  %s4669_s10 = inlined_call_operand.hbm [shape: f32[2,1,32], index: 10, kind: input, shape index: {}]   ;;  %s4670_s11 = inlined_call_operand.hbm [shape: f32[2,1,32], index: 11, kind: input, shape index: {}]   ;;  %s4671_s12 = inlined_call_operand.hbm [shape: f32[2,1,32], index: 12, kind: input, shape index: {}]   ;;  %s4672_s13 = inlined_call_operand.hbm [shape: bf16[2,32,128], index: 13, kind: input, shape index: {}]   ;;  %s4673_s14 = inlined_call_operand.hbm [shape: f32[2,1,128], index: 14, kind: input, shape index: {}]   ;;  %s4674_s15 = inlined_call_operand.hbm [shape: bf16[2,128,32], index: 15, kind: input, shape index: {}]   ;;  %s4675_s16 = inlined_call_operand.hbm [shape: f32[2,1,32], index: 16, kind: input, shape index: {}]   ;;  %s4676_s17 = inlined_call_operand.hbm [shape: f32[1,32], index: 17, kind: input, shape index: {}]   ;;  %s4677_s18 = inlined_call_operand.hbm [shape: f32[1,32], index: 18, kind: input, shape index: {}]   ;;  %s4678_s19 = inlined_call_operand.hbm [shape: bf16[2,8,32], index: 19, kind: output, shape index: {}]  }
   0x1   :  { %4728 = sst [smem:[#allocation61_spill]] %s4659_s0 }
   0x2   :  { %4729 = sst [smem:[#allocation62_spill]] %s4660_s1 }
   0x3   :  { %4730 = sst [smem:[#allocation63_spill]] %s4661_s2 }
   0x4   :  { %4731 = sst [smem:[#allocation64_spill]] %s4662_s3 }
   0x5   :  { %4732 = sst [smem:[#allocation65_spill]] %s4663_s4 }
   0x6   :  { %4733 = sst [smem:[#allocation66_spill]] %s4664_s5 }
   0x7   :  { %4734 = sst [smem:[#allocation67_spill]] %s4665_s6 }
   0x8   :  { %4735 = sst [smem:[#allocation68_spill]] %s4666_s7 }
   0x9   :  { %4736 = sst [smem:[#allocation69_spill]] %s4667_s8 }
   0xa   :  { %4737 = sst [smem:[#allocation70_spill]] %s4669_s10 }
   0xb   :  { %4738 = sst [smem:[#allocation71_spill]] %s4671_s12 }
   0xc   :  { %4739 = sst [smem:[#allocation72_spill]] %s4673_s14 }
   0xd   :  { %4740 = sst [smem:[#allocation73_spill]] %s4675_s16 }
   0xe   :  { %4741 = sst [smem:[#allocation74_spill]] %s4676_s17 }
   0xf   :  { %4742 = sst [smem:[#allocation75_spill]] %s4677_s18 }
  0x10   :  { %4743 = sst [smem:[#allocation76_spill]] %s4678_s19 }
  0x11   :  { %24 = vsyncpa [#allocation5], 0 }
  0x12   :  { %26 = vsyncpa [#allocation5 + $0x1], 0 }
  0x13   :  { %27 = vsyncpa [#allocation8], 0 }
  0x14   :  { %29 = vsyncpa [#allocation8 + $0x1], 0 }
  0x15   :  { %30 = vsyncpa [#allocation11], 0 }
  0x16   :  { %32 = vsyncpa [#allocation11 + $0x1], 0 }
  0x17   :  { %33 = vsyncpa [#allocation14], 0 }
  0x18   :  { %35 = vsyncpa [#allocation14 + $0x1], 0 }
  0x19   :  { %36 = vsyncpa [#allocation17], 0 }
  0x1a   :  { %38 = vsyncpa [#allocation17 + $0x1], 0 }
  0x1b   :  { %39 = vsyncpa [#allocation20], 0 }
  0x1c   :  { %41 = vsyncpa [#allocation20 + $0x1], 0 }
  0x1d   :  { %42 = vsyncpa [#allocation23], 0 }
  0x1e   :  { %44 = vsyncpa [#allocation23 + $0x1], 0 }
  0x1f   :  { %45 = vsyncpa [#allocation26], 0 }
  0x20   :  { %47 = vsyncpa [#allocation26 + $0x1], 0 }
  0x21   :  { %48 = vsyncpa [#allocation29], 0 }
  0x22   :  { %50 = vsyncpa [#allocation29 + $0x1], 0 }
  0x23   :  { %51 = vsyncpa [#allocation32], 0 }
  0x24   :  { %52 = vsyncpa [#allocation6], 0 }
  0x25   :  { %54 = vsyncpa [#allocation6 + $0x1], 0  ;;  %s3657_s0 = smov 0   ;;  %s3659_s30 = smov 0  }
  0x26   :  { %s3661_s20 = smov 0   ;;  %s3663_s21 = smov 0  }
  0x27   :  { %s3665_s1 = smov 0   ;;  %s3667_s22 = smov 0  }
  0x28   :  { %s3669_s2 = smov 0   ;;  %s3671_s23 = smov 0  }
  0x29   :  { %s3673_s24 = smov 0   ;;  %s3675_s25 = smov 0  }
  0x2a   :  { %s3677_s3 = smov 0  }
  0x2b LB: > { %4744 = sst [smem:[#allocation46_spill]] %s3493_s30  ;;  %s3713_s26 = sadd.s32 4294967295, %s3529_s3   ;;  %s3529_s3 = sphi %s3677_s3, %s60_s3   ;;  %s3525_s25 = sphi %s3675_s25, %s4846_s25   ;;  %s3521_s24 = sphi %s3673_s24, %s4845_s24   ;;  %s3517_s23 = sphi %s3671_s23, %s4844_s23   ;;  %s3513_s2 = sphi %s3669_s2, %s4843_s2   ;;  %s3509_s22 = sphi %s3667_s22, %s4842_s22   ;;  %s3505_s1 = sphi %s3665_s1, %s4841_s1   ;;  %s3501_s21 = sphi %s3663_s21, %s4840_s21   ;;  %s3497_s20 = sphi %s3661_s20, %s4836_s20   ;;  %s3493_s30 = sphi %s3659_s30, %s4835_s30   ;;  %s3489_s0 = sphi %s3657_s0, %s4834_s0  }
  0x2c   : > { %4745 = sst [smem:[#allocation47_spill]] %s3497_s20  ;;  %s2436_s27 = sadd.s32 4294967294, %s3529_s3  }
  0x2d   : > { %4746 = sst [smem:[#allocation48_spill]] %s3501_s21  ;;  %s69_s28 = sadd.s32 1, %s3521_s24 }
  0x2e   : > { %4747 = sst [smem:[#allocation49_spill]] %s3513_s2  ;;  %s72_s29 = sadd.s32 1, %s3525_s25 }
  0x2f   : > { %4748 = sst [smem:[#allocation50_spill]] %s3517_s23  ;;  %p70_p0 = scmp.ge.s32.totalorder %s69_s28, 2 }
  0x30   : > { %4749 = sst [smem:[#allocation51_spill]] %s3529_s3  ;;  %s79_s19 = sadd.s32 1, %s3509_s22 }
  0x31   : > { %4750 = sst [smem:[#allocation52_spill]] %s3713_s26  ;;  %p4692_p1 = scmp.ne.s32.totalorder %s3509_s22, %s3505_s1 }
  0x32   : > { %p87_p2 = scmp.eq.s32.totalorder %s3529_s3, 0  ;;  %s4848_s28 = smov (%p70_p0, %s69_s28), 0 }
  0x33   : > { %4751 = sst [smem:[#allocation53_spill]] %s4848_s28  ;;  %s4850_s29 = smov (!%p70_p0, %s72_s29), %s3525_s25 }
  0x34   : > { %p3730_p3 = por %p87_p2, %p4692_p1  ;;  %p4691_p4 = scmp.ne.s32.totalorder %s3505_s1, %s3501_s21 }
  0x35   : > { %p74_p5 = scmp.ge.s32.totalorder %s4850_s29, 2  ;;  %p4703_p6 = scmp.eq.s32.totalorder %s3713_s26, 0 }
  0x36   : > { %s4752_s23 = scalar_select %p3730_p3, 1, 0 }
  0x37   : > { %s102_s2 = ssub.s32 %s3521_s24, %s4848_s28  ;;  %s105_s16 = sadd.s32 1, %s3497_s20 }
  0x38   : > { %s4852_s29 = smov (%p74_p5, %s4850_s29), 0  ;;  %p3747_p7 = por %p4703_p6, %p4691_p4 }
  0x39   : > { %4753 = sst [smem:[#allocation54_spill]] %s4852_s29  ;;  %p103_p8 = scmp.eq.s32.totalorder %s102_s2, 0 }
  0x3a   : > { %s4754_s14 = scalar_select %p3747_p7, 1, 0 }
  0x3b   : > { %s76_s12 = ssub.s32 %s3525_s25, %s4852_s29  ;;  %p112_p9 = scmp.ne.s32.totalorder %s3497_s20, %s3493_s30 }
  0x3c   : > { %4755 = sst [smem:[#allocation55_spill]] %s4754_s14  ;;  %p77_p10 = scmp.eq.s32.totalorder %s76_s12, 0 }
  0x3d   : > { %p118_p11 = scmp.ne.s32.totalorder %s3493_s30, %s3489_s0  ;;  %p3765_p12 = por %p112_p9, %p87_p2 }
  0x3e   : > { %s3758_s28 = scalar_select %p103_p8, %s3497_s20, %s105_s16  }
  0x3f   : > { %s3761_s10 = scalar_select %p77_p10, %s3509_s22, %s79_s19  }
  0x40   : > { %4756 = sst [smem:[#allocation56_spill]] %s3758_s28  ;;  %p3771_p13 = por %p118_p11, %p4703_p6 }
  0x41   : > { %4757 = sst [smem:[#allocation57_spill]] %s3761_s10  ;;  %p574_p0 = scmp.eq.s32.totalorder %s3713_s26, 3 }
  0x42   : > { %s4758_s8 = scalar_select %p3765_p12, 1, 0 }
  0x43   : > { %s4759_s6 = scalar_select %p3771_p13, 1, 0 }
  0x44   : > { %p580_p5 = scmp.eq.s32.totalorder %s2436_s27, 3  ;;  %p2437_p4 = scmp.ge.s32.totalorder %s3529_s3, 1 }
  0x45   : > { %4760 = sst [smem:[#allocation58_spill]] %s4759_s6  ;;  %p587_p1 = scmp.lt.s32.totalorder %s3529_s3, 5 }
  0x46   : > { %p4761_p7 = scmp.ne.s32.totalorder %s3509_s22, %s3505_s1  ;;  %p4764_p10 = scmp.ne.s32.totalorder %s3505_s1, %s3501_s21 }
  0x47   : > { %p3792_p2 = pnand %p2437_p4, %p587_p1  ;;  %s3531_s0 = smov [#allocation31]  }
  0x48   : > { %p3781_p8 = por %p574_p0, %p4761_p7  ;;  %p3788_p3 = por %p580_p5, %p4764_p10 }
  0x49   : > { %s4767_s19 = scalar_select %p3792_p2, 1, 0 }
  0x4a   : > { %s4762_s12 = scalar_select %p3781_p8, 1, 0 }
  0x4b   : > { %s4765_s16 = scalar_select %p3788_p3, 1, 0 }
  0x4c   : > { %4763 = sst [smem:[#allocation59_spill]] %s4762_s12  ;;  %p2693_p9 = pneg %p3792_p2 }
  0x4d   : > { %4766 = sst [smem:[#allocation60_spill]] %s4765_s16  ;;  %s600_s2 = sshll.u32 %s3531_s0, 4  ;;  %s601_s2 = int_to_ptr.vmem [resolvable:$true] %s600_s2 }
  0x4e   : > { %s3532_s27 = smov [#allocation33]   ;;  %p3800_p7 = pnand %p2693_p9, %p4703_p6 }
  0x4f   : > { %s611_s29 = sshll.u32 %s3532_s27, 4  ;;  %s4769_s17 = sld [smem:[#allocation74_spill]]  ;;  %s3804_s29 = int_to_ptr.vmem [resolvable:$true] %s611_s29 }
  0x50   : > { %p2841_p4 = pneg %p3800_p7 }
  0x55   : > { %s2839_s21 = scalar_lea.hbm %s4769_s17, 16 }
  0x56   : > { %p2840_p1 = scmp.ne.s32.totalorder %s4769_s17, %s2839_s21  ;;  %p2846_p5 = scmp.lt.u32.totalorder %s2839_s21, %s4769_s17 }
  0x58   : > { %p2842_p11 = pnand %p2841_p4, %p2840_p1 }
  0x5a   : > { %p2843_p0 = pneg %p2842_p11 }
  0x5c   : > { %p2848_p10 = pnand %p2846_p5, %p2843_p0 }
  0x5e   : > { %2851 = shalt.err (!%p2848_p10)
}
  0x5f   : > { %s2852_s30 = scalar_lea.vmem %s601_s2, 16  ;;  %s2859_s6 = scalar_lea.vmem %s601_s2, 32 }
  0x60   : > { %p2853_p9 = scmp.ne.s32.totalorder %s601_s2, %s2852_s30  ;;  %p2860_p8 = scmp.lt.s32.totalorder %s601_s2, %s601_s2 }
  0x61   : > { %p2861_p13 = scmp.lt.s32.totalorder %s2859_s6, %s2852_s30 }
  0x62   : > { %p2855_p6 = pnand %p2853_p9, %p2841_p4 }
  0x63   : > { %p2862_p2 = por %p2861_p13, %p2860_p8 }
  0x64   : > { %p2856_p3 = pneg %p2855_p6 }
  0x66   : > { %p2863_p12 = pnand %p2862_p2, %p2856_p3 }
  0x68   : > { %2866 = shalt.err (!%p2863_p12)
}
  0x69   : > { %2696 = dma.hbm_to_vmem [thread:$0]  (!%p3800_p7), %s4769_s17, 16, %s601_s2, [#allocation32]  }
  0x6a   : > { %s4770_s18 = sld [smem:[#allocation75_spill]] }
  0x70   : > { %s2867_s0 = scalar_lea.hbm %s4770_s18, 16 }
  0x71   : > { %p2868_p6 = scmp.ne.s32.totalorder %s4770_s18, %s2867_s0  ;;  %p2874_p12 = scmp.lt.u32.totalorder %s2867_s0, %s4770_s18 }
  0x73   : > { %p2870_p13 = pnand %p2868_p6, %p2841_p4 }
  0x75   : > { %p2871_p3 = pneg %p2870_p13 }
  0x77   : > { %p2876_p8 = pnand %p2874_p12, %p2871_p3 }
  0x79   : > { %2879 = shalt.err (!%p2876_p8)
}
  0x7a   : > { %s2880_s2 = scalar_lea.vmem %s3804_s29, 16  ;;  %s2887_s26 = scalar_lea.vmem %s3804_s29, 32 }
  0x7b   : > { %p2881_p2 = scmp.ne.s32.totalorder %s3804_s29, %s2880_s2  ;;  %p2888_p0 = scmp.lt.s32.totalorder %s3804_s29, %s3804_s29 }
  0x7c   : > { %p2889_p5 = scmp.lt.s32.totalorder %s2887_s26, %s2880_s2 }
  0x7d   : > { %p2883_p1 = pnand %p2881_p2, %p2841_p4 }
  0x7e   : > { %p2890_p10 = por %p2889_p5, %p2888_p0 }
  0x7f   : > { %p2884_p11 = pneg %p2883_p1 }
  0x81   : > { %p2891_p9 = pnand %p2890_p10, %p2884_p11 }
  0x83   : > { %2894 = shalt.err (!%p2891_p9)
}
  0x84   : > { %2699 = dma.hbm_to_vmem [thread:$0]  (!%p3800_p7), %s4770_s18, 16, %s3804_s29, [#allocation32]  }
  0x85   : > { %p2440_p6 = scmp.ge.s32.totalorder %s3529_s3, 4 }
  0x86   : > { %s3856_s21 = sand.u32 (!%p2440_p6), 1, %s3529_s3   ;;  %s3859_s16 = sand.u32 (!%p2440_p6), 1, %s3497_s20  }
  0x87   : > { %618 = sbr.rel (%p2440_p6) target bundleno = 597 (0x255), region = 24  ;;  %s3862_s0 = sshll.u32 (!%p2440_p6), %s3521_s24, 4 }
  0x88   : > { %s643_s10 = scalar_lea.vmem (!%p2440_p6), [#allocation7], %s3859_s16  ;;  %s4771_s6 = sld [smem:[#allocation62_spill]] (!%p2440_p6) }
  0x89   : > { %s650_s27 = sshll.u32 (!%p2440_p6), %s643_s10, 4  ;;  %p4772_p4 = scmp.ne.s32.totalorder (!%p2440_p6), %s4758_s8, 0  ;;  %s651_s27 = int_to_ptr.vmem [resolvable:$true] %s650_s27 }
  0x8e   : > { %s3869_s2 = scalar_lea.hbm %s4771_s6, %s3862_s0  ;;  %s2899_s10 = scalar_lea.hbm %s4771_s6, 32 }
  0x8f   : > { %s2895_s28 = scalar_lea.hbm %s3869_s2, 16  ;;  %p2900_p12 = scmp.lt.u32.totalorder %s3869_s2, %s4771_s6 }
  0x90   : > { %p2896_p7 = scmp.ne.s32.totalorder %s3869_s2, %s2895_s28  ;;  %p2901_p8 = scmp.lt.u32.totalorder %s2899_s10, %s2895_s28 }
  0x91   : > { %p2903_p1 = scmp.lt.u32.totalorder %s2895_s28, %s3869_s2 }
  0x92   : > { %p2897_p13 = pnand %p2896_p7, %p4772_p4  ;;  %p2902_p2 = por %p2901_p8, %p2900_p12 }
  0x94   : > { %p2898_p3 = pneg %p2897_p13  ;;  %p2904_p11 = por %p2903_p1, %p2902_p2 }
  0x96   : > { %p2905_p0 = pnand %p2904_p11, %p2898_p3 }
  0x98   : > { %2908 = shalt.err (!%p2905_p0)
}
  0x99   : > { %s2909_s30 = scalar_lea.vmem %s651_s27, 16  ;;  %s3533_s29 = smov [#allocation7]  }
  0x9a   : > { %p2910_p5 = scmp.ne.s32.totalorder %s651_s27, %s2909_s30  ;;  %s2913_s26 = sshll.u32 %s3533_s29, 4  ;;  %s2914_s26 = int_to_ptr.vmem [resolvable:$false] %s2913_s26 }
  0x9b   : > { %s2915_s17 = scalar_lea.vmem %s2914_s26, 32  ;;  %p2916_p6 = scmp.lt.s32.totalorder %s651_s27, %s2914_s26 }
  0x9c   : > { %p2911_p10 = pnand %p2910_p5, %p4772_p4  ;;  %p2917_p7 = scmp.lt.s32.totalorder %s2915_s17, %s2909_s30 }
  0x9e   : > { %p2912_p9 = pneg %p2911_p10  ;;  %p2918_p13 = por %p2917_p7, %p2916_p6 }
  0xa0   : > { %p2919_p8 = pnand %p2918_p13, %p2912_p9 }
  0xa2   : > { %2922 = shalt.err (!%p2919_p8)
}
  0xa3   : > { %s4773_s18 = scalar_lea.sflag [#allocation8], %s3856_s21  ;;  %s3892_s20 = sshll.u32 %s3859_s16, 4 }
  0xa4   : > { %2654 = dma.hbm_to_vmem [thread:$0]  (%p4772_p4), %s3869_s2, 16, %s651_s27, %s4773_s18  }
  0xa5   : > { %s3895_s28 = sshll.u32 %s3521_s24, 8  ;;  %s4774_s10 = sld [smem:[#allocation64_spill]] }
  0xa6   : > { %s678_s29 = scalar_lea.vmem [#allocation10], %s3892_s20  ;;  %s4717_s27 = scalar_lea.sflag [#allocation11], %s3856_s21 }
  0xa7   : > { %s685_s17 = sshll.u32 %s678_s29, 4  ;;  %s3904_s17 = int_to_ptr.vmem [resolvable:$true] %s685_s17 }
  0xab   : > { %s3901_s30 = scalar_lea.hbm %s4774_s10, %s3895_s28  ;;  %s2927_s26 = scalar_lea.hbm %s4774_s10, 512 }
  0xac   : > { %s2923_s2 = scalar_lea.hbm %s3901_s30, 256  ;;  %p2928_p1 = scmp.lt.u32.totalorder %s3901_s30, %s4774_s10 }
  0xad   : > { %p2924_p3 = scmp.ne.s32.totalorder %s3901_s30, %s2923_s2  ;;  %p2929_p11 = scmp.lt.u32.totalorder %s2927_s26, %s2923_s2 }
  0xae   : > { %p2931_p5 = scmp.lt.u32.totalorder %s2923_s2, %s3901_s30 }
  0xaf   : > { %p2925_p12 = pnand %p2924_p3, %p4772_p4  ;;  %p2930_p0 = por %p2929_p11, %p2928_p1 }
  0xb1   : > { %p2926_p2 = pneg %p2925_p12  ;;  %p2932_p10 = por %p2931_p5, %p2930_p0 }
  0xb3   : > { %p2933_p9 = pnand %p2932_p10, %p2926_p2 }
  0xb5   : > { %2936 = shalt.err (!%p2933_p9)
}
  0xb6   : > { %s2937_s29 = scalar_lea.vmem %s3904_s17, 256  ;;  %s3534_s6 = smov [#allocation10]  }
  0xb7   : > { %p2938_p6 = scmp.ne.s32.totalorder %s3904_s17, %s2937_s29  ;;  %s2941_s18 = sshll.u32 %s3534_s6, 4  ;;  %s2942_s18 = int_to_ptr.vmem [resolvable:$false] %s2941_s18 }
  0xb8   : > { %s2943_s3 = scalar_lea.vmem %s2942_s18, 512  ;;  %p2944_p8 = scmp.lt.s32.totalorder %s3904_s17, %s2942_s18 }
  0xb9   : > { %p2939_p7 = pnand %p2938_p6, %p4772_p4  ;;  %p2945_p3 = scmp.lt.s32.totalorder %s2943_s3, %s2937_s29 }
  0xbb   : > { %p2940_p13 = pneg %p2939_p7  ;;  %p2946_p12 = por %p2945_p3, %p2944_p8 }
  0xbd   : > { %p2947_p1 = pnand %p2946_p12, %p2940_p13 }
  0xbf   : > { %2950 = shalt.err (!%p2947_p1)
}
  0xc0   : > { %s4721_s2 = smov 64   ;;  %s3536_s26 = smov 4  }
  0xc1   : > { %2656 = dma.hbm_to_vmem [thread:$0]  (%p4772_p4), %s3901_s30, 256, %s3904_s17, %s4717_s27, %s4721_s2, %s4721_s2, %s3536_s26  }
  0xc2   : > { %s4775_s5 = sld [smem:[#allocation66_spill]]  ;;  %s716_s18 = scalar_lea.vmem [#allocation13], %s3892_s20 }
  0xc3   : > { %s723_s3 = sshll.u32 %s716_s18, 4  ;;  %s4718_s10 = scalar_lea.sflag [#allocation14], %s3856_s21  ;;  %s3940_s3 = int_to_ptr.vmem [resolvable:$true] %s723_s3 }
  0xc8   : > { %s3937_s6 = scalar_lea.hbm %s4775_s5, %s3895_s28  ;;  %s2955_s12 = scalar_lea.hbm %s4775_s5, 512 }
  0xc9   : > { %s2951_s14 = scalar_lea.hbm %s3937_s6, 256  ;;  %p2956_p5 = scmp.lt.u32.totalorder %s3937_s6, %s4775_s5 }
  0xca   : > { %p2952_p2 = scmp.ne.s32.totalorder %s3937_s6, %s2951_s14  ;;  %p2957_p10 = scmp.lt.u32.totalorder %s2955_s12, %s2951_s14 }
  0xcb   : > { %p2959_p6 = scmp.lt.u32.totalorder %s2951_s14, %s3937_s6 }
  0xcc   : > { %p2953_p11 = pnand %p2952_p2, %p4772_p4  ;;  %p2958_p9 = por %p2957_p10, %p2956_p5 }
  0xce   : > { %p2954_p0 = pneg %p2953_p11  ;;  %p2960_p7 = por %p2959_p6, %p2958_p9 }
  0xd0   : > { %p2961_p13 = pnand %p2960_p7, %p2954_p0 }
  0xd2   : > { %2964 = shalt.err (!%p2961_p13)
}
  0xd3   : > { %s2965_s18 = scalar_lea.vmem %s3940_s3, 256  ;;  %s3537_s30 = smov [#allocation13]  }
  0xd4   : > { %p2966_p8 = scmp.ne.s32.totalorder %s3940_s3, %s2965_s18  ;;  %s2969_s17 = sshll.u32 %s3537_s30, 4  ;;  %s2970_s17 = int_to_ptr.vmem [resolvable:$false] %s2969_s17 }
  0xd5   : > { %s2971_s27 = scalar_lea.vmem %s2970_s17, 512  ;;  %p2972_p1 = scmp.lt.s32.totalorder %s3940_s3, %s2970_s17 }
  0xd6   : > { %p2967_p3 = pnand %p2966_p8, %p4772_p4  ;;  %p2973_p2 = scmp.lt.s32.totalorder %s2971_s27, %s2965_s18 }
  0xd8   : > { %p2968_p12 = pneg %p2967_p3  ;;  %p2974_p11 = por %p2973_p2, %p2972_p1 }
  0xda   : > { %p2975_p5 = pnand %p2974_p11, %p2968_p12 }
  0xdc   : > { %2978 = shalt.err (!%p2975_p5)
}
  0xdd   : > { %2658 = dma.hbm_to_vmem [thread:$0]  (%p4772_p4), %s3937_s6, 256, %s3940_s3, %s4718_s10, %s4721_s2, %s4721_s2, %s3536_s26  }
  0xde   : > { %s4776_s7 = sld [smem:[#allocation68_spill]]  ;;  %s754_s18 = scalar_lea.vmem [#allocation16], %s3892_s20 }
  0xdf   : > { %s761_s30 = sshll.u32 %s754_s18, 4  ;;  %s4719_s17 = scalar_lea.sflag [#allocation17], %s3856_s21  ;;  %s3976_s30 = int_to_ptr.vmem [resolvable:$true] %s761_s30 }
  0xe4   : > { %s3973_s29 = scalar_lea.hbm %s4776_s7, %s3895_s28  ;;  %s2983_s14 = scalar_lea.hbm %s4776_s7, 512 }
  0xe5   : > { %s2979_s27 = scalar_lea.hbm %s3973_s29, 256  ;;  %p2984_p6 = scmp.lt.u32.totalorder %s3973_s29, %s4776_s7 }
  0xe6   : > { %p2980_p0 = scmp.ne.s32.totalorder %s3973_s29, %s2979_s27  ;;  %p2985_p7 = scmp.lt.u32.totalorder %s2983_s14, %s2979_s27 }
  0xe7   : > { %p2987_p8 = scmp.lt.u32.totalorder %s2979_s27, %s3973_s29 }
  0xe8   : > { %p2981_p10 = pnand %p2980_p0, %p4772_p4  ;;  %p2986_p13 = por %p2985_p7, %p2984_p6 }
  0xea   : > { %p2982_p9 = pneg %p2981_p10  ;;  %p2988_p3 = por %p2987_p8, %p2986_p13 }
  0xec   : > { %p2989_p12 = pnand %p2988_p3, %p2982_p9 }
  0xee   : > { %2992 = shalt.err (!%p2989_p12)
}
  0xef   : > { %s2993_s18 = scalar_lea.vmem %s3976_s30, 256  ;;  %s3538_s6 = smov [#allocation16]  }
  0xf0   : > { %p2994_p1 = scmp.ne.s32.totalorder %s3976_s30, %s2993_s18  ;;  %s2997_s3 = sshll.u32 %s3538_s6, 4  ;;  %s2998_s3 = int_to_ptr.vmem [resolvable:$false] %s2997_s3 }
  0xf1   : > { %s2999_s10 = scalar_lea.vmem %s2998_s3, 512  ;;  %p3000_p5 = scmp.lt.s32.totalorder %s3976_s30, %s2998_s3 }
  0xf2   : > { %p2995_p2 = pnand %p2994_p1, %p4772_p4  ;;  %p3001_p0 = scmp.lt.s32.totalorder %s2999_s10, %s2993_s18 }
  0xf4   : > { %p2996_p11 = pneg %p2995_p2  ;;  %p3002_p10 = por %p3001_p0, %p3000_p5 }
  0xf6   : > { %p3003_p6 = pnand %p3002_p10, %p2996_p11 }
  0xf8   : > { %3006 = shalt.err (!%p3003_p6)
}
  0xf9   : > { %2660 = dma.hbm_to_vmem [thread:$0]  (%p4772_p4), %s3973_s29, 256, %s3976_s30, %s4719_s17, %s4721_s2, %s4721_s2, %s3536_s26  }
  0xfa   : > { %s4009_s12 = scalar_lea.hbm %s4668_s9, %s3895_s28  ;;  %s792_s18 = scalar_lea.vmem [#allocation19], %s3892_s20 }
  0xfb   : > { %s799_s6 = sshll.u32 %s792_s18, 4  ;;  %s4720_s3 = scalar_lea.sflag [#allocation20], %s3856_s21  ;;  %s4012_s6 = int_to_ptr.vmem [resolvable:$true] %s799_s6 }
  0xfc   : > { %s3007_s10 = scalar_lea.hbm %s4009_s12, 256  ;;  %s3011_s27 = scalar_lea.hbm %s4668_s9, 512 }
  0xfd   : > { %p3008_p9 = scmp.ne.s32.totalorder %s4009_s12, %s3007_s10  ;;  %p3012_p8 = scmp.lt.u32.totalorder %s4009_s12, %s4668_s9 }
  0xfe   : > { %p3013_p3 = scmp.lt.u32.totalorder %s3011_s27, %s3007_s10  ;;  %p3015_p1 = scmp.lt.u32.totalorder %s3007_s10, %s4009_s12 }
  0xff   : > { %p3009_p7 = pnand %p3008_p9, %p4772_p4 }
 0x100   : > { %p3014_p12 = por %p3013_p3, %p3012_p8 }
 0x101   : > { %p3010_p13 = pneg %p3009_p7 }
 0x102   : > { %p3016_p2 = por %p3015_p1, %p3014_p12 }
 0x104   : > { %p3017_p11 = pnand %p3016_p2, %p3010_p13 }
 0x106   : > { %3020 = shalt.err (!%p3017_p11)
}
 0x107   : > { %s3021_s18 = scalar_lea.vmem %s4012_s6, 256  ;;  %s3539_s29 = smov [#allocation19]  }
 0x108   : > { %p3022_p5 = scmp.ne.s32.totalorder %s4012_s6, %s3021_s18  ;;  %s3025_s30 = sshll.u32 %s3539_s29, 4  ;;  %s3026_s30 = int_to_ptr.vmem [resolvable:$false] %s3025_s30 }
 0x109   : > { %s3027_s17 = scalar_lea.vmem %s3026_s30, 512  ;;  %p3028_p6 = scmp.lt.s32.totalorder %s4012_s6, %s3026_s30 }
 0x10a   : > { %p3023_p0 = pnand %p3022_p5, %p4772_p4  ;;  %p3029_p9 = scmp.lt.s32.totalorder %s3027_s17, %s3021_s18 }
 0x10c   : > { %p3024_p10 = pneg %p3023_p0  ;;  %p3030_p7 = por %p3029_p9, %p3028_p6 }
 0x10e   : > { %p3031_p8 = pnand %p3030_p7, %p3024_p10 }
 0x110   : > { %3034 = shalt.err (!%p3031_p8)
}
 0x111   : > { %2662 = dma.hbm_to_vmem [thread:$0]  (%p4772_p4), %s4009_s12, 256, %s4012_s6, %s4720_s3, %s4721_s2, %s4721_s2, %s3536_s26  }
 0x112   : > { %s4045_s14 = scalar_lea.hbm %s4670_s11, %s3862_s0  ;;  %s829_s18 = scalar_lea.vmem [#allocation22], %s3859_s16 }
 0x113   : > { %s836_s29 = sshll.u32 %s829_s18, 4  ;;  %s4723_s30 = scalar_lea.sflag [#allocation23], %s3856_s21  ;;  %s837_s29 = int_to_ptr.vmem [resolvable:$true] %s836_s29 }
 0x114   : > { %s3035_s17 = scalar_lea.hbm %s4045_s14, 16  ;;  %s3039_s6 = scalar_lea.hbm %s4670_s11, 32 }
 0x115   : > { %p3036_p13 = scmp.ne.s32.totalorder %s4045_s14, %s3035_s17  ;;  %p3040_p1 = scmp.lt.u32.totalorder %s4045_s14, %s4670_s11 }
 0x116   : > { %p3041_p2 = scmp.lt.u32.totalorder %s3039_s6, %s3035_s17  ;;  %p3043_p5 = scmp.lt.u32.totalorder %s3035_s17, %s4045_s14 }
 0x117   : > { %p3037_p3 = pnand %p3036_p13, %p4772_p4 }
 0x118   : > { %p3042_p11 = por %p3041_p2, %p3040_p1 }
 0x119   : > { %p3038_p12 = pneg %p3037_p3 }
 0x11a   : > { %p3044_p0 = por %p3043_p5, %p3042_p11 }
 0x11c   : > { %p3045_p10 = pnand %p3044_p0, %p3038_p12 }
 0x11e   : > { %3048 = shalt.err (!%p3045_p10)
}
 0x11f   : > { %s3049_s18 = scalar_lea.vmem %s837_s29, 16  ;;  %s3540_s3 = smov [#allocation22]  }
 0x120   : > { %p3050_p6 = scmp.ne.s32.totalorder %s837_s29, %s3049_s18  ;;  %s3053_s2 = sshll.u32 %s3540_s3, 4  ;;  %s3054_s2 = int_to_ptr.vmem [resolvable:$false] %s3053_s2 }
 0x121   : > { %s3055_s5 = scalar_lea.vmem %s3054_s2, 32  ;;  %p3056_p8 = scmp.lt.s32.totalorder %s837_s29, %s3054_s2 }
 0x122   : > { %p3051_p9 = pnand %p3050_p6, %p4772_p4  ;;  %p3057_p13 = scmp.lt.s32.totalorder %s3055_s5, %s3049_s18 }
 0x124   : > { %p3052_p7 = pneg %p3051_p9  ;;  %p3058_p3 = por %p3057_p13, %p3056_p8 }
 0x126   : > { %p3059_p1 = pnand %p3058_p3, %p3052_p7 }
 0x128   : > { %3062 = shalt.err (!%p3059_p1)
}
 0x129   : > { %2664 = dma.hbm_to_vmem [thread:$0]  (%p4772_p4), %s4045_s14, 16, %s837_s29, %s4723_s30  }
 0x12a   : > { %s4072_s12 = scalar_lea.hbm %s4672_s13, %s3895_s28  ;;  %s864_s2 = scalar_lea.vmem [#allocation25], %s3892_s20 }
 0x12b   : > { %s871_s6 = sshll.u32 %s864_s2, 4  ;;  %s2467_s10 = sshll.u32 %s3859_s16, 6  ;;  %s4075_s6 = int_to_ptr.vmem [resolvable:$true] %s871_s6 }
 0x12c   : > { %s4724_s27 = scalar_lea.sflag [#allocation26], %s3856_s21  ;;  %s3063_s18 = scalar_lea.hbm %s4072_s12, 256 }
 0x12d   : > { %p3064_p12 = scmp.ne.s32.totalorder %s4072_s12, %s3063_s18  ;;  %s3067_s28 = scalar_lea.hbm %s4672_s13, 512 }
 0x12e   : > { %p3068_p5 = scmp.lt.u32.totalorder %s4072_s12, %s4672_s13  ;;  %p3069_p0 = scmp.lt.u32.totalorder %s3067_s28, %s3063_s18 }
 0x12f   : > { %p3065_p2 = pnand %p3064_p12, %p4772_p4  ;;  %p3071_p6 = scmp.lt.u32.totalorder %s3063_s18, %s4072_s12 }
 0x130   : > { %p3070_p10 = por %p3069_p0, %p3068_p5 }
 0x131   : > { %p3066_p11 = pneg %p3065_p2 }
 0x132   : > { %p3072_p9 = por %p3071_p6, %p3070_p10 }
 0x134   : > { %p3073_p7 = pnand %p3072_p9, %p3066_p11 }
 0x136   : > { %3076 = shalt.err (!%p3073_p7)
}
 0x137   : > { %s3077_s20 = scalar_lea.vmem %s4075_s6, 256  ;;  %s3541_s3 = smov [#allocation25]  }
 0x138   : > { %p3078_p8 = scmp.ne.s32.totalorder %s4075_s6, %s3077_s20  ;;  %s3081_s2 = sshll.u32 %s3541_s3, 4  ;;  %s3082_s2 = int_to_ptr.vmem [resolvable:$false] %s3081_s2 }
 0x139   : > { %s3083_s14 = scalar_lea.vmem %s3082_s2, 512  ;;  %p3084_p1 = scmp.lt.s32.totalorder %s4075_s6, %s3082_s2 }
 0x13a   : > { %p3079_p13 = pnand %p3078_p8, %p4772_p4  ;;  %p3085_p12 = scmp.lt.s32.totalorder %s3083_s14, %s3077_s20 }
 0x13c   : > { %p3080_p3 = pneg %p3079_p13  ;;  %p3086_p2 = por %p3085_p12, %p3084_p1 }
 0x13e   : > { %p3087_p5 = pnand %p3086_p2, %p3080_p3 }
 0x140   : > { %3090 = shalt.err (!%p3087_p5)
}
 0x141   : > { %s4777_s18 = smov 64   ;;  %s2532_s29 = sshll.u32 %s3521_s24, 10 }
 0x142   : > { %2666 = dma.hbm_to_vmem [thread:$0]  (%p4772_p4), %s4072_s12, 256, %s4075_s6, %s4724_s27, %s4777_s18, %s4777_s18, %s3536_s26  }
 0x143   : > { %s4109_s17 = scalar_lea.hbm %s4674_s15, %s2532_s29  ;;  %s902_s20 = scalar_lea.vmem [#allocation28], %s2467_s10 }
 0x144   : > { %s909_s3 = sshll.u32 %s902_s20, 4  ;;  %s622_s2 = sand.u32 1, %s3509_s22   ;;  %s4113_s3 = int_to_ptr.vmem [resolvable:$true] %s909_s3 }
 0x145   : > { %s4726_s14 = scalar_lea.sflag [#allocation29], %s3856_s21  ;;  %s3091_s30 = scalar_lea.hbm %s4109_s17, 1024 }
 0x146   : > { %p3092_p11 = scmp.ne.s32.totalorder %s4109_s17, %s3091_s30  ;;  %s3095_s29 = scalar_lea.hbm %s4674_s15, 2048 }
 0x147   : > { %p3096_p6 = scmp.lt.u32.totalorder %s4109_s17, %s4674_s15  ;;  %p3097_p9 = scmp.lt.u32.totalorder %s3095_s29, %s3091_s30 }
 0x148   : > { %p3093_p0 = pnand %p3092_p11, %p4772_p4  ;;  %p3099_p8 = scmp.lt.u32.totalorder %s3091_s30, %s4109_s17 }
 0x149   : > { %p3098_p7 = por %p3097_p9, %p3096_p6 }
 0x14a   : > { %p3094_p10 = pneg %p3093_p0 }
 0x14b   : > { %p3100_p13 = por %p3099_p8, %p3098_p7 }
 0x14d   : > { %p3101_p3 = pnand %p3100_p13, %p3094_p10 }
 0x14f   : > { %3104 = shalt.err (!%p3101_p3)
}
 0x150   : > { %s3105_s10 = scalar_lea.vmem %s4113_s3, 1024  ;;  %s3542_s20 = smov [#allocation28]  }
 0x151   : > { %p3106_p1 = scmp.ne.s32.totalorder %s4113_s3, %s3105_s10  ;;  %s3109_s12 = sshll.u32 %s3542_s20, 4  ;;  %s3110_s12 = int_to_ptr.vmem [resolvable:$false] %s3109_s12 }
 0x152   : > { %s3111_s6 = scalar_lea.vmem %s3110_s12, 2048  ;;  %p3112_p5 = scmp.lt.s32.totalorder %s4113_s3, %s3110_s12 }
 0x153   : > { %p3107_p12 = pnand %p3106_p1, %p4772_p4  ;;  %p3113_p11 = scmp.lt.s32.totalorder %s3111_s6, %s3105_s10 }
 0x155   : > { %p3108_p2 = pneg %p3107_p12  ;;  %p3114_p0 = por %p3113_p11, %p3112_p5 }
 0x157   : > { %p3115_p6 = pnand %p3114_p0, %p3108_p2 }
 0x159   : > { %3118 = shalt.err (!%p3115_p6)
}
 0x15a   : > { %2668 = dma.hbm_to_vmem [thread:$0]  (%p4772_p4), %s4109_s17, 1024, %s4113_s3, %s4726_s14, %s4777_s18, %s4777_s18, %s3536_s26  }
 0x15b   : > { %s2441_s30 = sshll.u32 %s622_s2, 3  ;;  %s2442_s29 = sshll.u32 %s3525_s25, 7 }
 0x15c   : > { %s4778_s10 = sld [smem:[#allocation61_spill]]  ;;  %s626_s12 = scalar_lea.vmem [#allocation4], %s2441_s30 }
 0x15d   : > { %s633_s6 = sshll.u32 %s626_s12, 4  ;;  %s623_s27 = scalar_lea.sflag [#allocation5], %s622_s2  ;;  %s634_s6 = int_to_ptr.vmem [resolvable:$true] %s633_s6 }
 0x15e   : > { %p4779_p9 = scmp.ne.s32.totalorder %s4752_s23, 0 }
 0x162   : > { %s4149_s20 = scalar_lea.hbm %s4778_s10, %s2442_s29  ;;  %s3123_s17 = scalar_lea.hbm %s4778_s10, 256 }
 0x163   : > { %s3119_s7 = scalar_lea.hbm %s4149_s20, 128  ;;  %p3124_p13 = scmp.lt.u32.totalorder %s4149_s20, %s4778_s10 }
 0x164   : > { %p3120_p10 = scmp.ne.s32.totalorder %s4149_s20, %s3119_s7  ;;  %p3125_p3 = scmp.lt.u32.totalorder %s3123_s17, %s3119_s7 }
 0x165   : > { %p3127_p12 = scmp.lt.u32.totalorder %s3119_s7, %s4149_s20 }
 0x166   : > { %p3121_p7 = pnand %p3120_p10, %p4779_p9  ;;  %p3126_p1 = por %p3125_p3, %p3124_p13 }
 0x168   : > { %p3122_p8 = pneg %p3121_p7  ;;  %p3128_p2 = por %p3127_p12, %p3126_p1 }
 0x16a   : > { %p3129_p5 = pnand %p3128_p2, %p3122_p8 }
 0x16c   : > { %3132 = shalt.err (!%p3129_p5)
}
 0x16d   : > { %s3133_s2 = scalar_lea.vmem %s634_s6, 128  ;;  %s3543_s30 = smov [#allocation4]  }
 0x16e   : > { %p3134_p11 = scmp.ne.s32.totalorder %s634_s6, %s3133_s2  ;;  %s3137_s28 = sshll.u32 %s3543_s30, 4  ;;  %s3138_s28 = int_to_ptr.vmem [resolvable:$false] %s3137_s28 }
 0x16f   : > { %s3139_s5 = scalar_lea.vmem %s3138_s28, 256  ;;  %p3140_p10 = scmp.lt.s32.totalorder %s634_s6, %s3138_s28 }
 0x170   : > { %p3135_p0 = pnand %p3134_p11, %p4779_p9  ;;  %p3141_p7 = scmp.lt.s32.totalorder %s3139_s5, %s3133_s2 }
 0x172   : > { %p3136_p6 = pneg %p3135_p0  ;;  %p3142_p4 = por %p3141_p7, %p3140_p10 }
 0x174   : > { %p3143_p3 = pnand %p3142_p4, %p3136_p6 }
 0x176   : > { %3146 = shalt.err (!%p3143_p3)
}
 0x177   : > { %2653 = dma.hbm_to_vmem [thread:$0]  (%p4779_p9), %s4149_s20, 128, %s634_s6, %s623_s27  }
 0x178   : > { %s4780_s26 = sld [smem:[#allocation63_spill]]  ;;  %s660_s17 = scalar_lea.vmem [#allocation9], %s3859_s16 }
 0x179   : > { %s667_s3 = sshll.u32 %s660_s17, 4  ;;  %p4781_p8 = scmp.ne.s32.totalorder %s4758_s8, 0  ;;  %s668_s3 = int_to_ptr.vmem [resolvable:$true] %s667_s3 }
 0x17e   : > { %s4174_s18 = scalar_lea.hbm %s4780_s26, %s3862_s0  ;;  %s3151_s27 = scalar_lea.hbm %s4780_s26, 32 }
 0x17f   : > { %s3147_s29 = scalar_lea.hbm %s4174_s18, 16  ;;  %p3152_p9 = scmp.lt.u32.totalorder %s4174_s18, %s4780_s26 }
 0x180   : > { %p3148_p4 = scmp.ne.s32.totalorder %s4174_s18, %s3147_s29  ;;  %p3153_p12 = scmp.lt.u32.totalorder %s3151_s27, %s3147_s29 }
 0x181   : > { %p3155_p5 = scmp.lt.u32.totalorder %s3147_s29, %s4174_s18 }
 0x182   : > { %p3149_p13 = pnand %p3148_p4, %p4781_p8  ;;  %p3154_p2 = por %p3153_p12, %p3152_p9 }
 0x184   : > { %p3150_p1 = pneg %p3149_p13  ;;  %p3156_p11 = por %p3155_p5, %p3154_p2 }
 0x186   : > { %p3157_p0 = pnand %p3156_p11, %p3150_p1 }
 0x188   : > { %3160 = shalt.err (!%p3157_p0)
}
 0x189   : > { %s3161_s30 = scalar_lea.vmem %s668_s3, 16  ;;  %s3544_s28 = smov [#allocation9]  }
 0x18a   : > { %p3162_p6 = scmp.ne.s32.totalorder %s668_s3, %s3161_s30  ;;  %s3165_s5 = sshll.u32 %s3544_s28, 4  ;;  %s3166_s5 = int_to_ptr.vmem [resolvable:$false] %s3165_s5 }
 0x18b   : > { %s3167_s7 = scalar_lea.vmem %s3166_s5, 32  ;;  %p3168_p3 = scmp.lt.s32.totalorder %s668_s3, %s3166_s5 }
 0x18c   : > { %p3163_p10 = pnand %p3162_p6, %p4781_p8  ;;  %p3169_p4 = scmp.lt.s32.totalorder %s3167_s7, %s3161_s30 }
 0x18e   : > { %p3164_p7 = pneg %p3163_p10  ;;  %p3170_p13 = por %p3169_p4, %p3168_p3 }
 0x190   : > { %p3171_p9 = pnand %p3170_p13, %p3164_p7 }
 0x192   : > { %3174 = shalt.err (!%p3171_p9)
}
 0x193   : > { %s4782_s12 = scalar_lea.sflag [#allocation8], %s3856_s21  ;;  %s4783_s4 = sld [smem:[#allocation65_spill]] }
 0x194   : > { %2655 = dma.hbm_to_vmem [thread:$0]  (%p4781_p8), %s4174_s18, 16, %s668_s3, %s4782_s12  }
 0x195   : > { %s698_s2 = scalar_lea.vmem [#allocation12], %s3859_s16 }
 0x196   : > { %s705_s27 = sshll.u32 %s698_s2, 4  ;;  %s706_s27 = int_to_ptr.vmem [resolvable:$true] %s705_s27 }
 0x199   : > { %s4200_s23 = scalar_lea.hbm %s4783_s4, %s3862_s0  ;;  %s3179_s18 = scalar_lea.hbm %s4783_s4, 32 }
 0x19a   : > { %s3175_s20 = scalar_lea.hbm %s4200_s23, 16  ;;  %p3180_p5 = scmp.lt.u32.totalorder %s4200_s23, %s4783_s4 }
 0x19b   : > { %p3176_p1 = scmp.ne.s32.totalorder %s4200_s23, %s3175_s20  ;;  %p3181_p11 = scmp.lt.u32.totalorder %s3179_s18, %s3175_s20 }
 0x19c   : > { %p3183_p6 = scmp.lt.u32.totalorder %s3175_s20, %s4200_s23 }
 0x19d   : > { %p3177_p12 = pnand %p3176_p1, %p4781_p8  ;;  %p3182_p0 = por %p3181_p11, %p3180_p5 }
 0x19f   : > { %p3178_p2 = pneg %p3177_p12  ;;  %p3184_p10 = por %p3183_p6, %p3182_p0 }
 0x1a1   : > { %p3185_p7 = pnand %p3184_p10, %p3178_p2 }
 0x1a3   : > { %3188 = shalt.err (!%p3185_p7)
}
 0x1a4   : > { %s3189_s5 = scalar_lea.vmem %s706_s27, 16  ;;  %s3545_s7 = smov [#allocation12]  }
 0x1a5   : > { %p3190_p3 = scmp.ne.s32.totalorder %s706_s27, %s3189_s5  ;;  %s3193_s12 = sshll.u32 %s3545_s7, 4  ;;  %s3194_s12 = int_to_ptr.vmem [resolvable:$false] %s3193_s12 }
 0x1a6   : > { %s3195_s17 = scalar_lea.vmem %s3194_s12, 32  ;;  %p3196_p9 = scmp.lt.s32.totalorder %s706_s27, %s3194_s12 }
 0x1a7   : > { %p3191_p4 = pnand %p3190_p3, %p4781_p8  ;;  %p3197_p1 = scmp.lt.s32.totalorder %s3195_s17, %s3189_s5 }
 0x1a9   : > { %p3192_p13 = pneg %p3191_p4  ;;  %p3198_p12 = por %p3197_p1, %p3196_p9 }
 0x1ab   : > { %p3199_p5 = pnand %p3198_p12, %p3192_p13 }
 0x1ad   : > { %3202 = shalt.err (!%p3199_p5)
}
 0x1ae   : > { %s4784_s29 = scalar_lea.sflag [#allocation11], %s3856_s21  ;;  %s4785_s6 = sld [smem:[#allocation67_spill]] }
 0x1af   : > { %2657 = dma.hbm_to_vmem [thread:$0]  (%p4781_p8), %s4200_s23, 16, %s706_s27, %s4784_s29  }
 0x1b0   : > { %s736_s18 = scalar_lea.vmem [#allocation15], %s3859_s16 }
 0x1b1   : > { %s743_s3 = sshll.u32 %s736_s18, 4  ;;  %s744_s3 = int_to_ptr.vmem [resolvable:$true] %s743_s3 }
 0x1b4   : > { %s4226_s30 = scalar_lea.hbm %s4785_s6, %s3862_s0  ;;  %s3207_s23 = scalar_lea.hbm %s4785_s6, 32 }
 0x1b5   : > { %s3203_s28 = scalar_lea.hbm %s4226_s30, 16  ;;  %p3208_p6 = scmp.lt.u32.totalorder %s4226_s30, %s4785_s6 }
 0x1b6   : > { %p3204_p2 = scmp.ne.s32.totalorder %s4226_s30, %s3203_s28  ;;  %p3209_p10 = scmp.lt.u32.totalorder %s3207_s23, %s3203_s28 }
 0x1b7   : > { %p3211_p3 = scmp.lt.u32.totalorder %s3203_s28, %s4226_s30 }
 0x1b8   : > { %p3205_p11 = pnand %p3204_p2, %p4781_p8  ;;  %p3210_p7 = por %p3209_p10, %p3208_p6 }
 0x1ba   : > { %p3206_p0 = pneg %p3205_p11  ;;  %p3212_p4 = por %p3211_p3, %p3210_p7 }
 0x1bc   : > { %p3213_p13 = pnand %p3212_p4, %p3206_p0 }
 0x1be   : > { %3216 = shalt.err (!%p3213_p13)
}
 0x1bf   : > { %s3217_s17 = scalar_lea.vmem %s744_s3, 16  ;;  %s3546_s29 = smov [#allocation15]  }
 0x1c0   : > { %p3218_p9 = scmp.ne.s32.totalorder %s744_s3, %s3217_s17  ;;  %s3221_s2 = sshll.u32 %s3546_s29, 4  ;;  %s3222_s2 = int_to_ptr.vmem [resolvable:$false] %s3221_s2 }
 0x1c1   : > { %s3223_s20 = scalar_lea.vmem %s3222_s2, 32  ;;  %p3224_p5 = scmp.lt.s32.totalorder %s744_s3, %s3222_s2 }
 0x1c2   : > { %p3219_p1 = pnand %p3218_p9, %p4781_p8  ;;  %p3225_p2 = scmp.lt.s32.totalorder %s3223_s20, %s3217_s17 }
 0x1c4   : > { %p3220_p12 = pneg %p3219_p1  ;;  %p3226_p11 = por %p3225_p2, %p3224_p5 }
 0x1c6   : > { %p3227_p6 = pnand %p3226_p11, %p3220_p12 }
 0x1c8   : > { %3230 = shalt.err (!%p3227_p6)
}
 0x1c9   : > { %s4786_s18 = scalar_lea.sflag [#allocation14], %s3856_s21  ;;  %s4787_s7 = sld [smem:[#allocation69_spill]] }
 0x1ca   : > { %2659 = dma.hbm_to_vmem [thread:$0]  (%p4781_p8), %s4226_s30, 16, %s744_s3, %s4786_s18  }
 0x1cb   : > { %s774_s27 = scalar_lea.vmem [#allocation18], %s3859_s16 }
 0x1cc   : > { %s781_s12 = sshll.u32 %s774_s27, 4  ;;  %s782_s12 = int_to_ptr.vmem [resolvable:$true] %s781_s12 }
 0x1cf   : > { %s4252_s23 = scalar_lea.hbm %s4787_s7, %s3862_s0  ;;  %s3235_s30 = scalar_lea.hbm %s4787_s7, 32 }
 0x1d0   : > { %s3231_s17 = scalar_lea.hbm %s4252_s23, 16  ;;  %p3236_p3 = scmp.lt.u32.totalorder %s4252_s23, %s4787_s7 }
 0x1d1   : > { %p3232_p0 = scmp.ne.s32.totalorder %s4252_s23, %s3231_s17  ;;  %p3237_p4 = scmp.lt.u32.totalorder %s3235_s30, %s3231_s17 }
 0x1d2   : > { %p3239_p9 = scmp.lt.u32.totalorder %s3231_s17, %s4252_s23 }
 0x1d3   : > { %p3233_p10 = pnand %p3232_p0, %p4781_p8  ;;  %p3238_p13 = por %p3237_p4, %p3236_p3 }
 0x1d5   : > { %p3234_p7 = pneg %p3233_p10  ;;  %p3240_p1 = por %p3239_p9, %p3238_p13 }
 0x1d7   : > { %p3241_p12 = pnand %p3240_p1, %p3234_p7 }
 0x1d9   : > { %3244 = shalt.err (!%p3241_p12)
}
 0x1da   : > { %s3245_s18 = scalar_lea.vmem %s782_s12, 16  ;;  %s3547_s28 = smov [#allocation18]  }
 0x1db   : > { %p3246_p5 = scmp.ne.s32.totalorder %s782_s12, %s3245_s18  ;;  %s3249_s5 = sshll.u32 %s3547_s28, 4  ;;  %s3250_s5 = int_to_ptr.vmem [resolvable:$false] %s3249_s5 }
 0x1dc   : > { %s3251_s27 = scalar_lea.vmem %s3250_s5, 32  ;;  %p3252_p6 = scmp.lt.s32.totalorder %s782_s12, %s3250_s5 }
 0x1dd   : > { %p3247_p2 = pnand %p3246_p5, %p4781_p8  ;;  %p3253_p0 = scmp.lt.s32.totalorder %s3251_s27, %s3245_s18 }
 0x1df   : > { %p3248_p11 = pneg %p3247_p2  ;;  %p3254_p10 = por %p3253_p0, %p3252_p6 }
 0x1e1   : > { %p3255_p3 = pnand %p3254_p10, %p3248_p11 }
 0x1e3   : > { %3258 = shalt.err (!%p3255_p3)
}
 0x1e4   : > { %s4788_s17 = scalar_lea.sflag [#allocation17], %s3856_s21  ;;  %s4789_s30 = sld [smem:[#allocation70_spill]] }
 0x1e5   : > { %2661 = dma.hbm_to_vmem [thread:$0]  (%p4781_p8), %s4252_s23, 16, %s782_s12, %s4788_s17  }
 0x1e6   : > { %s812_s20 = scalar_lea.vmem [#allocation21], %s3859_s16 }
 0x1e7   : > { %s819_s18 = sshll.u32 %s812_s20, 4  ;;  %s820_s18 = int_to_ptr.vmem [resolvable:$true] %s819_s18 }
 0x1ea   : > { %s4790_s14 = smov %s4789_s30  ;;  %s4278_s3 = scalar_lea.hbm %s4789_s30, %s3862_s0 }
 0x1eb   : > { %s3259_s28 = scalar_lea.hbm %s4278_s3, 16  ;;  %s3263_s23 = scalar_lea.hbm %s4790_s14, 32 }
 0x1ec   : > { %p3260_p7 = scmp.ne.s32.totalorder %s4278_s3, %s3259_s28  ;;  %p3264_p9 = scmp.lt.u32.totalorder %s4278_s3, %s4790_s14 }
 0x1ed   : > { %p3265_p1 = scmp.lt.u32.totalorder %s3263_s23, %s3259_s28  ;;  %p3267_p5 = scmp.lt.u32.totalorder %s3259_s28, %s4278_s3 }
 0x1ee   : > { %p3261_p4 = pnand %p3260_p7, %p4781_p8 }
 0x1ef   : > { %p3266_p12 = por %p3265_p1, %p3264_p9 }
 0x1f0   : > { %p3262_p13 = pneg %p3261_p4 }
 0x1f1   : > { %p3268_p2 = por %p3267_p5, %p3266_p12 }
 0x1f3   : > { %p3269_p11 = pnand %p3268_p2, %p3262_p13 }
 0x1f5   : > { %3272 = shalt.err (!%p3269_p11)
}
 0x1f6   : > { %s3273_s29 = scalar_lea.vmem %s820_s18, 16  ;;  %s3548_s2 = smov [#allocation21]  }
 0x1f7   : > { %p3274_p6 = scmp.ne.s32.totalorder %s820_s18, %s3273_s29  ;;  %s3277_s30 = sshll.u32 %s3548_s2, 4  ;;  %s3278_s30 = int_to_ptr.vmem [resolvable:$false] %s3277_s30 }
 0x1f8   : > { %s3279_s20 = scalar_lea.vmem %s3278_s30, 32  ;;  %p3280_p3 = scmp.lt.s32.totalorder %s820_s18, %s3278_s30 }
 0x1f9   : > { %p3275_p0 = pnand %p3274_p6, %p4781_p8  ;;  %p3281_p7 = scmp.lt.s32.totalorder %s3279_s20, %s3273_s29 }
 0x1fb   : > { %p3276_p10 = pneg %p3275_p0  ;;  %p3282_p4 = por %p3281_p7, %p3280_p3 }
 0x1fd   : > { %p3283_p1 = pnand %p3282_p4, %p3276_p10 }
 0x1ff   : > { %3286 = shalt.err (!%p3283_p1)
}
 0x200   : > { %s4791_s28 = scalar_lea.sflag [#allocation20], %s3856_s21  ;;  %s4792_s23 = sld [smem:[#allocation71_spill]] }
 0x201   : > { %2663 = dma.hbm_to_vmem [thread:$0]  (%p4781_p8), %s4278_s3, 16, %s820_s18, %s4791_s28  }
 0x202   : > { %s846_s29 = scalar_lea.vmem [#allocation24], %s3859_s16 }
 0x203   : > { %s853_s2 = sshll.u32 %s846_s29, 4  ;;  %s854_s2 = int_to_ptr.vmem [resolvable:$true] %s853_s2 }
 0x206   : > { %s4793_s12 = smov %s4792_s23  ;;  %s4304_s17 = scalar_lea.hbm %s4792_s23, %s3862_s0 }
 0x207   : > { %s3287_s30 = scalar_lea.hbm %s4304_s17, 16  ;;  %s3291_s3 = scalar_lea.hbm %s4793_s12, 32 }
 0x208   : > { %p3288_p13 = scmp.ne.s32.totalorder %s4304_s17, %s3287_s30  ;;  %p3292_p5 = scmp.lt.u32.totalorder %s4304_s17, %s4793_s12 }
 0x209   : > { %p3293_p2 = scmp.lt.u32.totalorder %s3291_s3, %s3287_s30  ;;  %p3295_p6 = scmp.lt.u32.totalorder %s3287_s30, %s4304_s17 }
 0x20a   : > { %p3289_p9 = pnand %p3288_p13, %p4781_p8 }
 0x20b   : > { %p3294_p11 = por %p3293_p2, %p3292_p5 }
 0x20c   : > { %p3290_p12 = pneg %p3289_p9 }
 0x20d   : > { %p3296_p0 = por %p3295_p6, %p3294_p11 }
 0x20f   : > { %p3297_p10 = pnand %p3296_p0, %p3290_p12 }
 0x211   : > { %3300 = shalt.err (!%p3297_p10)
}
 0x212   : > { %s3301_s5 = scalar_lea.vmem %s854_s2, 16  ;;  %s3549_s27 = smov [#allocation24]  }
 0x213   : > { %p3302_p3 = scmp.ne.s32.totalorder %s854_s2, %s3301_s5  ;;  %s3305_s23 = sshll.u32 %s3549_s27, 4  ;;  %s3306_s23 = int_to_ptr.vmem [resolvable:$false] %s3305_s23 }
 0x214   : > { %s3307_s4 = scalar_lea.vmem %s3306_s23, 32  ;;  %p3308_p1 = scmp.lt.s32.totalorder %s854_s2, %s3306_s23 }
 0x215   : > { %p3303_p7 = pnand %p3302_p3, %p4781_p8  ;;  %p3309_p13 = scmp.lt.s32.totalorder %s3307_s4, %s3301_s5 }
 0x217   : > { %p3304_p4 = pneg %p3303_p7  ;;  %p3310_p9 = por %p3309_p13, %p3308_p1 }
 0x219   : > { %p3311_p2 = pnand %p3310_p9, %p3304_p4 }
 0x21b   : > { %3314 = shalt.err (!%p3311_p2)
}
 0x21c   : > { %s4794_s29 = scalar_lea.sflag [#allocation23], %s3856_s21  ;;  %s4795_s3 = sld [smem:[#allocation72_spill]] }
 0x21d   : > { %2665 = dma.hbm_to_vmem [thread:$0]  (%p4781_p8), %s4304_s17, 16, %s854_s2, %s4794_s29  }
 0x21e   : > { %s884_s5 = scalar_lea.vmem [#allocation27], %s3859_s16 }
 0x21f   : > { %s891_s27 = sshll.u32 %s884_s5, 4  ;;  %s892_s27 = int_to_ptr.vmem [resolvable:$true] %s891_s27 }
 0x222   : > { %s4796_s18 = smov %s4795_s3  ;;  %s4330_s28 = scalar_lea.hbm %s4795_s3, %s3862_s0 }
 0x223   : > { %s3315_s23 = scalar_lea.hbm %s4330_s28, 16  ;;  %s3319_s17 = scalar_lea.hbm %s4796_s18, 32 }
 0x224   : > { %p3316_p12 = scmp.ne.s32.totalorder %s4330_s28, %s3315_s23  ;;  %p3320_p6 = scmp.lt.u32.totalorder %s4330_s28, %s4796_s18 }
 0x225   : > { %p3321_p0 = scmp.lt.u32.totalorder %s3319_s17, %s3315_s23  ;;  %p3323_p3 = scmp.lt.u32.totalorder %s3315_s23, %s4330_s28 }
 0x226   : > { %p3317_p5 = pnand %p3316_p12, %p4781_p8 }
 0x227   : > { %p3322_p10 = por %p3321_p0, %p3320_p6 }
 0x228   : > { %p3318_p11 = pneg %p3317_p5 }
 0x229   : > { %p3324_p7 = por %p3323_p3, %p3322_p10 }
 0x22b   : > { %p3325_p4 = pnand %p3324_p7, %p3318_p11 }
 0x22d   : > { %3328 = shalt.err (!%p3325_p4)
}
 0x22e   : > { %s3329_s30 = scalar_lea.vmem %s892_s27, 16  ;;  %s3550_s20 = smov [#allocation27]  }
 0x22f   : > { %p3330_p1 = scmp.ne.s32.totalorder %s892_s27, %s3329_s30  ;;  %s3333_s3 = sshll.u32 %s3550_s20, 4  ;;  %s3334_s3 = int_to_ptr.vmem [resolvable:$false] %s3333_s3 }
 0x230   : > { %s3335_s6 = scalar_lea.vmem %s3334_s3, 32  ;;  %p3336_p2 = scmp.lt.s32.totalorder %s892_s27, %s3334_s3 }
 0x231   : > { %p3331_p13 = pnand %p3330_p1, %p4781_p8  ;;  %p3337_p12 = scmp.lt.s32.totalorder %s3335_s6, %s3329_s30 }
 0x233   : > { %p3332_p9 = pneg %p3331_p13  ;;  %p3338_p5 = por %p3337_p12, %p3336_p2 }
 0x235   : > { %p3339_p0 = pnand %p3338_p5, %p3332_p9 }
 0x237   : > { %3342 = shalt.err (!%p3339_p0)
}
 0x238   : > { %s4797_s5 = scalar_lea.sflag [#allocation26], %s3856_s21  ;;  %s4798_s17 = sld [smem:[#allocation73_spill]] }
 0x239   : > { %2667 = dma.hbm_to_vmem [thread:$0]  (%p4781_p8), %s4330_s28, 16, %s892_s27, %s4797_s5  }
 0x23a   : > { %s922_s29 = scalar_lea.vmem [#allocation30], %s3859_s16 }
 0x23b   : > { %s929_s30 = sshll.u32 %s922_s29, 4  ;;  %s930_s30 = int_to_ptr.vmem [resolvable:$true] %s929_s30 }
 0x23e   : > { %s4356_s2 = scalar_lea.hbm %s4798_s17, %s3862_s0  ;;  %s3347_s28 = scalar_lea.hbm %s4798_s17, 32 }
 0x23f   : > { %s3343_s20 = scalar_lea.hbm %s4356_s2, 16  ;;  %p3348_p3 = scmp.lt.u32.totalorder %s4356_s2, %s4798_s17 }
 0x240   : > { %p3344_p11 = scmp.ne.s32.totalorder %s4356_s2, %s3343_s20  ;;  %p3349_p7 = scmp.lt.u32.totalorder %s3347_s28, %s3343_s20 }
 0x241   : > { %p3351_p1 = scmp.lt.u32.totalorder %s3343_s20, %s4356_s2 }
 0x242   : > { %p3345_p6 = pnand %p3344_p11, %p4781_p8  ;;  %p3350_p4 = por %p3349_p7, %p3348_p3 }
 0x244   : > { %p3346_p10 = pneg %p3345_p6  ;;  %p3352_p13 = por %p3351_p1, %p3350_p4 }
 0x246   : > { %p3353_p9 = pnand %p3352_p13, %p3346_p10 }
 0x248   : > { %3356 = shalt.err (!%p3353_p9)
}
 0x249   : > { %s3357_s16 = scalar_lea.vmem %s930_s30, 16  ;;  %s3551_s0 = smov [#allocation30]  }
 0x24a   : > { %p3358_p2 = scmp.ne.s32.totalorder %s930_s30, %s3357_s16  ;;  %s3361_s23 = sshll.u32 %s3551_s0, 4  ;;  %s3362_s23 = int_to_ptr.vmem [resolvable:$false] %s3361_s23 }
 0x24b   : > { %s3363_s4 = scalar_lea.vmem %s3362_s23, 32  ;;  %p3364_p0 = scmp.lt.s32.totalorder %s930_s30, %s3362_s23 }
 0x24c   : > { %p3359_p12 = pnand %p3358_p2, %p4781_p8  ;;  %p3365_p11 = scmp.lt.s32.totalorder %s3363_s4, %s3357_s16 }
 0x24e   : > { %p3360_p5 = pneg %p3359_p12  ;;  %p3366_p6 = por %p3365_p11, %p3364_p0 }
 0x250   : > { %p3367_p3 = pnand %p3366_p6, %p3360_p5 }
 0x252   : > { %3370 = shalt.err (!%p3367_p3)
}
 0x253   : > { %s4799_s29 = scalar_lea.sflag [#allocation29], %s3856_s21 }
 0x254   : > { %2669 = dma.hbm_to_vmem [thread:$0]  (%p4781_p8), %s4356_s2, 16, %s930_s30, %s4799_s29  }
 0x255 PF: > { %p4800_p10 = scmp.ne.s32.totalorder %s4767_s19, 0 }
 0x256   : > { %s4801_s20 = sld [smem:[#allocation55_spill]] (!%p4800_p10)  ;;  %s4381_s3 = sand.u32 (!%p4800_p10), 1, %s3505_s1  }
 0x257   : > { %938 = sbr.rel (%p4800_p10) target bundleno = 3514 (0xdba), region = 96  ;;  %s2472_s6 = sshll.u32 (!%p4800_p10), %s4381_s3, 3 }
 0x258   : > { %s941_s28 = scalar_lea.sflag (!%p4800_p10), [#allocation5], %s4381_s3  ;;  %s4385_s27 = scalar_lea.vmem (!%p4800_p10), [#allocation4], %s2472_s6 }
 0x25c   : > { %p4802_p7 = scmp.ne.s32.totalorder (!%p4800_p10), %s4801_s20, 0 }
 0x25e   : > { %3444 = dma.done.wait (%p4802_p7), %s941_s28, 128  }
 0x25f   : > { %3446 = vsyncadd (%p4802_p7), %s941_s28, 4294967168  ;;  %s4803_s8 = sld [smem:[#allocation52_spill]]  ;;  %s4804_s21 = sld [smem:[#allocation46_spill]] }
 0x260   : > { %s4805_s2 = sld [smem:[#allocation58_spill]] }
 0x265   : > { %s4392_s19 = sand.u32 1, %s4803_s8   ;;  %s4395_s30 = sand.u32 1, %s4804_s21  }
 0x266   : > { %s950_s5 = scalar_lea.sflag [#allocation8], %s4392_s19  ;;  %s952_s16 = scalar_lea.vmem [#allocation7], %s4395_s30 }
 0x267   : > { %p4806_p8 = scmp.ne.s32.totalorder %s4805_s2, 0 }
 0x269   : > { %3448 = dma.done.wait (%p4806_p8), %s950_s5, 32  }
 0x26a   : > { %3450 = vsyncadd (%p4806_p8), %s950_s5, 4294967264  ;;  %s4404_s0 = sshll.u32 %s4395_s30, 4  ;;  %s966_s4 = scalar_lea.sflag [#allocation11], %s4392_s19 }
 0x26b   : > { %s969_s29 = scalar_lea.vmem [#allocation10], %s4404_s0 }
 0x26c   : > { %3452 = dma.done.wait (%p4806_p8), %s966_s4, 272  }
 0x26d   : > { %3454 = vsyncadd (%p4806_p8), %s966_s4, 4294967024  ;;  %s983_s6 = scalar_lea.sflag [#allocation14], %s4392_s19 }
 0x26e   : > { %3456 = dma.done.wait (%p4806_p8), %s983_s6, 272  }
 0x26f   : > { %3458 = vsyncadd (%p4806_p8), %s983_s6, 4294967024  ;;  %s1000_s5 = scalar_lea.sflag [#allocation17], %s4392_s19 }
 0x270   : > { %3460 = dma.done.wait (%p4806_p8), %s1000_s5, 272  }
 0x271   : > { %3462 = vsyncadd (%p4806_p8), %s1000_s5, 4294967024  ;;  %s1017_s20 = scalar_lea.sflag [#allocation20], %s4392_s19 }
 0x272   : > { %3464 = dma.done.wait (%p4806_p8), %s1017_s20, 272  }
 0x273   : > { %3466 = vsyncadd (%p4806_p8), %s1017_s20, 4294967024  ;;  %s1034_s21 = scalar_lea.sflag [#allocation23], %s4392_s19 }
 0x274   : > { %3468 = dma.done.wait (%p4806_p8), %s1034_s21, 32  }
 0x275   : > { %3470 = vsyncadd (%p4806_p8), %s1034_s21, 4294967264  ;;  %s1050_s28 = scalar_lea.sflag [#allocation26], %s4392_s19 }
 0x276   : > { %3472 = dma.done.wait (%p4806_p8), %s1050_s28, 272  }
 0x277   : > { %3474 = vsyncadd (%p4806_p8), %s1050_s28, 4294967024  ;;  %s2478_s20 = sshll.u32 %s4395_s30, 6  ;;  %s1061_s23 = scalar_lea.vmem [#allocation27], %s4395_s30 }
 0x278   : > { %s1067_s6 = scalar_lea.sflag [#allocation29], %s4392_s19  ;;  %s4451_s21 = scalar_lea.vmem [#allocation28], %s2478_s20 }
 0x279   : > { %3476 = dma.done.wait (%p4806_p8), %s1067_s6, 1040  }
 0x27a   : > { %3478 = vsyncadd (%p4806_p8), %s1067_s6, 4294966256  ;;  %s1078_s5 = scalar_lea.vmem [#allocation30], %s4395_s30  ;;  %p4807_p4 = scmp.eq.s32.totalorder %s4803_s8, 0 }
 0x27c   : > { %3480 = dma.done.wait (%p4807_p4), [#allocation32], 32   ;;  %p4808_p1 = pmov %p4807_p4 }
 0x27d   : > { %s2481_s28 = sshll.u32 %s4381_s3, 2  ;;  %s4809_s19 = sld [smem:[#allocation49_spill]] }
 0x27e   : > { %3482 = vsyncadd (%p4808_p1), [#allocation32], 4294967264  ;;  %s4463_s4 = scalar_lea.vmem [#allocation34], %s2481_s28 }
 0x283   : > { %p2482_p13 = scmp.ne.s32.totalorder %s4809_s19, 0 }
 0x284   : > { %v1216_v0 = vld [vmem:[%s4385_s27] sm:$0xff] (!%p2482_p13)  ;;  %vm1217_vm0 = vcmask (!%p2482_p13), 261120  }
 0x285   : > { %1215 = sbr.rel (%p2482_p13) target bundleno = 652 (0x28c), region = 176  ;;  %1218 = vst.msk [vmem:[#allocation2] sm:$0xff] (!%p2482_p13), %vm1217_vm0, %v1216_v0 }
 0x28c PF: > { %v4467_v1 = vld [vmem:[#allocation2] sm:$0xff]  ;;  %vm1222_vm1 = vcmask 261120   ;;  %v3552_v9 = vmov 0.0   ;;  %vm3553_vm2 = vmmov 0   ;;  %s4810_s27 = scalar_lea.vmem [#allocation9], %s4395_s30  ;;  %s4811_s8 = scalar_lea.vmem [#allocation13], %s4404_s0  ;;  %v1444_v51 = vlaneseq }
 0x28d   : > { %v1223_v2 = vsel %vm1222_vm1, %v4467_v1, 0.0  ;;  %v2805_v8 = vld [vmem:[%s969_s29] sm:$0xff]   ;;  %2565 = vmatprep.subr.bf16.mxu0 %v3552_v9  ;;  %2569 = vmatprep.mubr.msk.bf16.mxu0 %vm3553_vm2, %v3552_v9  ;;  %v2806_v10 = vld [vmem:[%s969_s29 + $0x8] sm:$0xff]   ;;  %s4812_s2 = smov %s4811_s8  ;;  %s4815_s6 = scalar_lea.vmem [#allocation15], %s4395_s30  ;;  %vm1452_vm3 = vcmask 130048   ;;  %vm1517_vm4 = vcmask 1043456  }
 0x28e   : > { %1224 = vadd.xlane.f32.xlu0 %v1223_v2  ;;  %2566 = vmatpush3.bf16.msra.mxu0 %v2805_v8  ;;  %v2483_v15 = vld [vmem:[%s952_s16] ss:$0 sm:$0xff]  ;;  %v2807_v20 = vld [vmem:[%s4811_s8] sm:$0xff]   ;;  %s4813_s16 = scalar_lea.vmem [#allocation16], %s4404_s0  ;;  %s4816_s20 = scalar_lea.vmem [#allocation12], %s4395_s30  ;;  %v1445_v52 = vshrl.u32 %v1444_v51, 7 }
 0x28f   : > { %2589 = vmatprep.subr.bf16.mxu1 %v3552_v9  ;;  %2567 = vmatprep.subr.bf16.mxu0 %v3552_v9  ;;  %v2484_v17 = vld [vmem:[%s4810_s27] ss:$0 sm:$0xff]  ;;  %v2808_v22 = vld [vmem:[%s4812_s2 + $0x8] sm:$0xff]   ;;  %s4814_s29 = smov %s4813_s16  ;;  %s3554_s28 = smov 112   ;;  %v1447_v53 = vand.u32 127, %v1444_v51  ;;  %vm1501_vm6 = vcmask 64512  }
 0x290   : > { %2591 = vmatprep.mubr.msk.bf16.mxu1 %vm3553_vm2, %v3552_v9  ;;  %v2809_v23 = vld [vmem:[%s4813_s16] sm:$0xff]   ;;  %v2489_v29 = vld [vmem:[%s4815_s6] ss:$0 sm:$0xff]  ;;  %s4817_s19 = scalar_lea.vmem [#allocation18], %s4395_s30  ;;  %s4818_s27 = scalar_lea.vmem [#allocation19], %s4404_s0  ;;  %vm1681_vm7 = vcmask 261248  }
 0x291   : > { %v2810_v24 = vld [vmem:[%s4814_s29 + $0x8] sm:$0xff]   ;;  %v2485_v30 = vld [vmem:[%s4816_s20] ss:$0 sm:$0xff]  ;;  %vm1448_vm5 = vcmp.ge.s32.totalorder %v1445_v52, %v1447_v53  ;;  %s4819_s8 = smov %s4818_s27  ;;  %s3555_s2 = smov 16   ;;  %v2815_v53 = vld [vmem:[%s4451_s21] sm:$0xff]  }
 0x292   : > { %2568 = vmatpush3.bf16.msra.mxu0 %v2806_v10  ;;  %v2493_v39 = vld [vmem:[%s4817_s19] ss:$0 sm:$0xff]  ;;  %s4820_s16 = scalar_lea.vmem [#allocation21], %s4395_s30  ;;  %s4821_s29 = scalar_lea.vmem [#allocation25], %s4404_s0 }
 0x293   : > { %2573 = vmatprep.subr.bf16.mxu0 %v3552_v9  ;;  %v2813_v52 = vld [vmem:[%s4821_s29] sm:$0xff]   ;;  %s4822_s6 = smov %s4821_s29  ;;  %s4823_s20 = scalar_lea.vmem [#allocation22], %s4395_s30 }
 0x294   : > { %s4825_s0 = sld [smem:[#allocation49_spill]] }
 0x29a   : > { %p2520_p9 = scmp.ne.s32.totalorder %s4825_s0, 1 }
 0x29b   : > { %vm2005_vm8 = vcmask (!%p2520_p9), 257024  }
 0x31b   : > { %v1225_v3 = vpop.xlane.xlu0 %1224 }
 0x31c   : > { %v1227_v4 = vmul.f32 0.03125, %v1225_v3 }
 0x31e   : > { %v1228_v5 = vsub.f32 %v4467_v1, %v1227_v4 }
 0x320   : > { %v1229_v6 = vmul.f32 %v1228_v5, %v1228_v5 }
 0x322   : > { %v1230_v7 = vsel %vm1222_vm1, %v1229_v6, 0.0 }
 0x323   : > { %1231 = vadd.xlane.f32.xlu0 %v1230_v7 }
 0x3b0   : > { %v1232_v11 = vpop.xlane.xlu0 %1231 }
 0x3b1   : > { %v1233_v12 = vmul.f32 0.03125, %v1232_v11 }
 0x3b3   : > { %v1234_v13 = vadd.f32 1e-05, %v1233_v12 }
 0x3b5   : > { %2823 = vrsqrt.f32 %v1234_v13 }
 0x3bf   : > { %v2824_v14 = vpop.eup %2823 }
 0x3c0   : > { %v1236_v16 = vmul.f32 %v2824_v14, %v1228_v5 }
 0x3c2   : > { %v1243_v18 = vmul.f32 %v2483_v15, %v1236_v16 }
 0x3c4   : > { %v1250_v19 = vadd.f32 %v2484_v17, %v1243_v18 }
 0x3c6   : > { %v1251_v21 = vpack.c.bf16 %v1250_v19, %v1250_v19 }
 0x3c8   : > { %2570 = vmatmul.mubr.msk.bf16.vlgmr.msra.gmra.mrb[0].mxu0 %vm1222_vm1, %v1251_v21 }
 0x3c9   : > { %2574 = vmatpush3.bf16.msra.mxu0 %v2807_v20  ;;  %2577 = vmatprep.mubr.msk.bf16.mxu0 %vm3553_vm2, %v3552_v9 }
 0x3ca   : > { %2575 = vmatprep.subr.bf16.mxu0 %v3552_v9 }
 0x3cd   : > { %2576 = vmatpush3.bf16.msra.mxu0 %v2808_v22 }
 0x3ce   : > { %2581 = vmatprep.subr.bf16.mxu0 %v3552_v9 }
 0x3d0   : > { %2578 = vmatmul.mubr.msk.bf16.vlgmr.msra.gmra.mrb[4].mxu0 %vm1222_vm1, %v1251_v21 }
 0x3d1   : > { %2582 = vmatpush3.bf16.msra.mxu0 %v2809_v23  ;;  %2585 = vmatprep.mubr.msk.bf16.mxu0 %vm3553_vm2, %v3552_v9 }
 0x3d2   : > { %2583 = vmatprep.subr.bf16.mxu0 %v3552_v9 }
 0x3d5   : > { %2584 = vmatpush3.bf16.msra.mxu0 %v2810_v24 }
 0x3d6   : > { %2595 = vmatprep.subr.bf16.mxu0 %v3552_v9 }
 0x3d8   : > { %2586 = vmatmul.mubr.msk.bf16.vlgmr.msra.gmra.mrb[8].mxu0 %vm1222_vm1, %v1251_v21 }
 0x3d9   : > { %2597 = vmatprep.mubr.msk.bf16.mxu0 %vm3553_vm2, %v3552_v9 }
 0x49b   : > { %v1312_v25 = vpop.f32.mrb[0].mxu0 }
 0x49c   : > { %v2571_v26 = vpop.f32.mrb[1].mxu0  ;;  %v1313_v35 = vadd.f32 %v2485_v30, %v1312_v25  ;;  %v2811_v30 = vld [vmem:[%s4818_s27] sm:$0xff]  }
 0x49d   : > { %v1315_v27 = vpop.f32.mrb[2].mxu0 }
 0x49e   : > { %v2572_v28 = vpop.f32.mrb[3].mxu0  ;;  %v1449_v40 = vpack.c.bf16 %v1313_v35, %v1313_v35 }
 0x4a3   : > { %v1375_v31 = vpop.f32.mrb[4].mxu0 }
 0x4a4   : > { %v1376_v32 = vadd.f32 %v2489_v29, %v1375_v31  ;;  %v2579_v33 = vpop.f32.mrb[5].mxu0  ;;  %v2812_v31 = vld [vmem:[%s4819_s8 + $0x8] sm:$0xff]  }
 0x4a5   : > { %v1378_v34 = vpop.f32.mrb[6].mxu0 }
 0x4a6   : > { %v1450_v36 = vpack.c.bf16 %v1376_v32, %v1376_v32  ;;  %v2580_v37 = vpop.f32.mrb[7].mxu0 }
 0x4a8   : > { %1566 = vrot.lane.b32.xlu1 %v1450_v36, %s3554_s28  ;;  %v1457_v38 = vsel %vm1452_vm3, %v1450_v36, 0 }
 0x4a9   : > { %2590 = vmatpush3.bf16.xpose.msra.mxu1 %v1457_v38 }
 0x4aa   : > { %2601 = vmatprep.subr.bf16.mxu1 %v3552_v9 }
 0x4ab   : > { %v1438_v41 = vpop.f32.mrb[8].mxu0 }
 0x4ac   : > { %v1439_v42 = vadd.f32 %v2493_v39, %v1438_v41  ;;  %1563 = vrot.lane.b32.xlu1 %v1449_v40, %s3554_s28  ;;  %v2587_v43 = vpop.f32.mrb[9].mxu0  ;;  %v2501_v39 = vld [vmem:[%s4820_s16] ss:$0 sm:$0xff] }
 0x4ad   : > { %v1441_v44 = vpop.f32.mrb[10].mxu0 }
 0x4ae   : > { %v1451_v45 = vpack.c.bf16 %v1439_v42, %v1439_v42  ;;  %v2588_v46 = vpop.f32.mrb[11].mxu0 }
 0x4b0   : > { %v1519_v47 = vsel %vm1517_vm4, %v1451_v45, 0  ;;  %2592 = vmatmul.mubr.msk.bf16.vlgmr.msra.gmra.mrb[0].mxu1 %vm1452_vm3, %v1449_v40 }
 0x4b1   : > { %2596 = vmatpush3.bf16.msra.mxu0 %v1519_v47  ;;  %2603 = vmatprep.mubr.msk.bf16.mxu1 %vm3553_vm2, %v3552_v9 }
 0x4b2   : > { %2607 = vmatprep.subr.bf16.mxu0 %v3552_v9 }
 0x51a   : > { %v1567_v48 = vpop.permute.xlu1 %1566 }
 0x51b   : > { %v1572_v49 = vsel %vm1452_vm3, %v1567_v48, 0 }
 0x51c   : > { %2602 = vmatpush3.bf16.xpose.msra.mxu1 %v1572_v49 }
 0x51d   : > { %2613 = vmatprep.subr.bf16.mxu1 %v3552_v9 }
 0x51e   : > { %v1564_v50 = vpop.permute.xlu1 %1563 }
 0x523   : > { %2604 = vmatmul.mubr.msk.bf16.vlgmr.msra.gmra.mrb[4].mxu1 %vm1452_vm3, %v1564_v50 }
 0x524   : > { %2617 = vmatprep.mubr.msk.bf16.mxu1 %vm3553_vm2, %v3552_v9  ;;  %2614 = vmatpush3.bf16.msra.mxu1 %v2811_v30 }
 0x525   : > { %2615 = vmatprep.subr.bf16.mxu1 %v3552_v9 }
 0x528   : > { %2616 = vmatpush3.bf16.msra.mxu1 %v2812_v31 }
 0x529   : > { %2629 = vmatprep.subr.bf16.mxu1 %v3552_v9 }
 0x583   : > { %v1493_v54 = vpop.f32.mrb[0].mxu1 }
 0x584   : > { %v1499_v55 = vmul.f32 0.25, %v1493_v54  ;;  %v2593_v56 = vpop.f32.mrb[1].mxu1 }
 0x585   : > { %v1496_v57 = vpop.f32.mrb[2].mxu1 }
 0x586   : > { %v2594_v58 = vpop.f32.mrb[3].mxu1  ;;  %v1500_v59 = vsel %vm1448_vm5, %v1499_v55, -1e+30 }
 0x587   : > { %v1502_v60 = vsel %vm1501_vm6, %v1500_v59, -inf  ;;  %v2505_v58 = vld [vmem:[%s4823_s20] ss:$0 sm:$0xff] }
 0x588   : > { %1503 = vmax.xlane.f32.xlu0 %v1502_v60 }
 0x5f6   : > { %v1608_v61 = vpop.f32.mrb[4].mxu1 }
 0x5f7   : > { %v1614_v62 = vmul.f32 0.25, %v1608_v61  ;;  %v2605_v63 = vpop.f32.mrb[5].mxu1 }
 0x5f8   : > { %v1611_v0 = vpop.f32.mrb[6].mxu1 }
 0x5f9   : > { %v2606_v2 = vpop.f32.mrb[7].mxu1  ;;  %v1615_v3 = vsel %vm1448_vm5, %v1614_v62, -1e+30  ;;  %v2816_v0 = vld [vmem:[%s4451_s21 + $0x8] sm:$0xff]  }
 0x5fa   : > { %v1616_v4 = vsel %vm1501_vm6, %v1615_v3, -inf  ;;  %v2817_v2 = vld [vmem:[%s4451_s21 + $0x10] sm:$0xff]  }
 0x5fb   : > { %1617 = vmax.xlane.f32.xlu1 %v1616_v4  ;;  %v2819_v4 = vld [vmem:[%s4451_s21 + $0x20] sm:$0xff]  }
 0x615   : > { %v1504_v5 = vpop.xlane.xlu0 %1503 }
 0x616   : > { %v1505_v6 = vsub.f32 %v1500_v59, %v1504_v5  ;;  %v2820_v5 = vld [vmem:[%s4451_s21 + $0x28] sm:$0xff]  }
 0x618   : > { %v1506_v7 = vmul.f32 1.442695, %v1505_v6  ;;  %v2821_v6 = vld [vmem:[%s4451_s21 + $0x30] sm:$0xff]  }
 0x61a   : > { %2825 = vpow2.f32 %v1506_v7  ;;  %v2822_v7 = vld [vmem:[%s4451_s21 + $0x38] sm:$0xff]  }
 0x624   : > { %v2826_v8 = vpop.eup %2825 }
 0x625   : > { %v1508_v10 = vsel %vm1501_vm6, %v2826_v8, 0.0 }
 0x626   : > { %1509 = vadd.xlane.f32.xlu0 %v1508_v10 }
 0x688   : > { %v1618_v11 = vpop.xlane.xlu1 %1617 }
 0x689   : > { %v1619_v12 = vsub.f32 %v1615_v3, %v1618_v11  ;;  %v2818_v3 = vld [vmem:[%s4451_s21 + $0x18] sm:$0xff]  }
 0x68b   : > { %v1620_v13 = vmul.f32 1.442695, %v1619_v12 }
 0x68d   : > { %2827 = vpow2.f32 %v1620_v13 }
 0x697   : > { %v2828_v14 = vpop.eup %2827 }
 0x698   : > { %v1622_v15 = vsel %vm1501_vm6, %v2828_v14, 0.0 }
 0x699   : > { %1623 = vadd.xlane.f32.xlu0 %v1622_v15 }
 0x6af   : > { %1629 = vrot.lane.b32.xlu0 %v1451_v45, %s3554_s28  ;;  %s4824_s28 = scalar_lea.vmem [#allocation24], %s4395_s30 }
 0x6b0   : > { %v2506_v60 = vld [vmem:[%s4824_s28] ss:$0 sm:$0xff] }
 0x6b3   : > { %v1510_v16 = vpop.xlane.xlu0 %1509 }
 0x6b4   : > { %2829 = vrcp.f32 %v1510_v16 }
 0x6be   : > { %v2830_v17 = vpop.eup %2829 }
 0x6bf   : > { %v1512_v18 = vmul.f32 %v2830_v17, %v2826_v8  ;;  %v2507_v8 = vld [vmem:[%s1061_s23] ss:$0 sm:$0xff] }
 0x6c1   : > { %v1513_v19 = vpack.c.bf16 %v1512_v18, %v1512_v18 }
 0x6c3   : > { %2598 = vmatmul.mubr.msk.bf16.vlgmr.msra.gmra.mrb[12].mxu0 %vm1501_vm6, %v1513_v19 }
 0x6c4   : > { %2609 = vmatprep.mubr.msk.bf16.mxu0 %vm3553_vm2, %v3552_v9 }
 0x726   : > { %v1624_v20 = vpop.xlane.xlu0 %1623 }
 0x727   : > { %2831 = vrcp.f32 %v1624_v20 }
 0x72a   : > { %v1630_v21 = vpop.permute.xlu0 %1629 }
 0x72b   : > { %v1635_v22 = vsel %vm1517_vm4, %v1630_v21, 0 }
 0x72c   : > { %2608 = vmatpush3.bf16.msra.mxu0 %v1635_v22 }
 0x72d   : > { %2621 = vmatprep.subr.bf16.mxu0 %v3552_v9 }
 0x731   : > { %v2832_v23 = vpop.eup %2831 }
 0x732   : > { %v1626_v24 = vmul.f32 %v2832_v23, %v2828_v14 }
 0x734   : > { %v1627_v25 = vpack.c.bf16 %v1626_v24, %v1626_v24  ;;  %v2511_v24 = vld [vmem:[%s1078_s5] ss:$0 sm:$0xff] }
 0x736   : > { %2610 = vmatmul.mubr.msk.bf16.vlgmr.msra.gmra.mrb[16].mxu0 %vm1501_vm6, %v1627_v25 }
 0x737   : > { %2625 = vmatprep.mubr.msk.bf16.mxu0 %vm3553_vm2, %v3552_v9  ;;  %2622 = vmatpush3.bf16.msra.mxu0 %v2813_v52 }
 0x738   : > { %2623 = vmatprep.subr.bf16.mxu0 %v3552_v9 }
 0x796   : > { %v1555_v26 = vpop.f32.mrb[12].mxu0 }
 0x797   : > { %1561 = vst.msk [vmem:[#allocation3] sm:$0xff] %vm1452_vm3, %v1555_v26  ;;  %v2599_v27 = vpop.f32.mrb[13].mxu0 }
 0x798   : > { %v1558_v28 = vpop.f32.mrb[14].mxu0 }
 0x799   : > { %v2600_v29 = vpop.f32.mrb[15].mxu0 }
 0x809   : > { %v1671_v32 = vpop.f32.mrb[16].mxu0 }
 0x80a   : > { %1678 = vrot.lane.b32.xlu0 %v1671_v32, %s3555_s2  ;;  %v2611_v33 = vpop.f32.mrb[17].mxu0 }
 0x80b   : > { %v1674_v34 = vpop.f32.mrb[18].mxu0 }
 0x80c   : > { %v2612_v35 = vpop.f32.mrb[19].mxu0 }
 0x87c   : > { %v1679_v36 = vpop.permute.xlu0 %1678 }
 0x87d   : > { %1682 = vst.msk [vmem:[#allocation3] sm:$0xff] %vm1681_vm7, %v1679_v36 }
 0x884   : > { %v1683_v37 = vld [vmem:[#allocation3] sm:$0xff] }
 0x885   : > { %v1684_v38 = vpack.c.bf16 %v1683_v37, %v1683_v37 }
 0x887   : > { %2618 = vmatmul.mubr.msk.bf16.vlgmr.msra.gmra.mrb[8].mxu1 %vm1222_vm1, %v1684_v38 }
 0x888   : > { %2645 = vmatprep.mubr.msk.bf16.mxu1 %vm3553_vm2, %v3552_v9  ;;  %2630 = vmatpush3.bf16.msra.mxu1 %v2815_v53 }
 0x889   : > { %2631 = vmatprep.subr.bf16.mxu1 %v3552_v9 }
 0x88c   : > { %2632 = vmatpush3.bf16.msra.mxu1 %v2816_v0 }
 0x88d   : > { %2633 = vmatprep.subr.bf16.mxu1 %v3552_v9 }
 0x890   : > { %2634 = vmatpush3.bf16.msra.mxu1 %v2817_v2 }
 0x891   : > { %2635 = vmatprep.subr.bf16.mxu1 %v3552_v9 }
 0x894   : > { %2636 = vmatpush3.bf16.msra.mxu1 %v2818_v3 }
 0x895   : > { %2637 = vmatprep.subr.bf16.mxu1 %v3552_v9 }
 0x898   : > { %2638 = vmatpush3.bf16.msra.mxu1 %v2819_v4 }
 0x899   : > { %2639 = vmatprep.subr.bf16.mxu1 %v3552_v9 }
 0x89c   : > { %2640 = vmatpush3.bf16.msra.mxu1 %v2820_v5 }
 0x89d   : > { %2641 = vmatprep.subr.bf16.mxu1 %v3552_v9 }
 0x8a0   : > { %2642 = vmatpush3.bf16.msra.mxu1 %v2821_v6 }
 0x8a1   : > { %2643 = vmatprep.subr.bf16.mxu1 %v3552_v9 }
 0x8a4   : > { %2644 = vmatpush3.bf16.msra.mxu1 %v2822_v7 }
 0x95a   : > { %v1745_v40 = vpop.f32.mrb[8].mxu1 }
 0x95b   : > { %v1746_v41 = vadd.f32 %v2501_v39, %v1745_v40  ;;  %v2619_v42 = vpop.f32.mrb[9].mxu1 }
 0x95c   : > { %v1748_v43 = vpop.f32.mrb[10].mxu1 }
 0x95d   : > { %v4556_v44 = vadd.f32 %v1746_v41, %v4467_v1  ;;  %v2620_v45 = vpop.f32.mrb[11].mxu1  ;;  %v2814_v1 = vld [vmem:[%s4822_s6 + $0x8] sm:$0xff]   ;;  %v2521_v41 = vld [vmem:[#allocation31] ss:$0 sm:$0xff] (!%p2520_p9)  ;;  %v2522_v43 = vld [vmem:[#allocation33] ss:$0 sm:$0xff] (!%p2520_p9) }
 0x95e   : > { %2624 = vmatpush3.bf16.msra.mxu0 %v2814_v1 }
 0x95f   : > { %v1754_v46 = vsel %vm1222_vm1, %v4556_v44, 0.0 }
 0x960   : > { %1755 = vadd.xlane.f32.xlu1 %v1754_v46 }
 0x9ed   : > { %v1756_v47 = vpop.xlane.xlu1 %1755 }
 0x9ee   : > { %v1757_v48 = vmul.f32 0.03125, %v1756_v47 }
 0x9f0   : > { %v1758_v49 = vsub.f32 %v4556_v44, %v1757_v48 }
 0x9f2   : > { %v1759_v50 = vmul.f32 %v1758_v49, %v1758_v49 }
 0x9f4   : > { %v1760_v51 = vsel %vm1222_vm1, %v1759_v50, 0.0 }
 0x9f5   : > { %1761 = vadd.xlane.f32.xlu0 %v1760_v51 }
 0xa82   : > { %v1762_v54 = vpop.xlane.xlu0 %1761 }
 0xa83   : > { %v1763_v55 = vmul.f32 0.03125, %v1762_v54 }
 0xa85   : > { %v1764_v56 = vadd.f32 1e-05, %v1763_v55 }
 0xa87   : > { %2833 = vrsqrt.f32 %v1764_v56 }
 0xa91   : > { %v2834_v57 = vpop.eup %2833 }
 0xa92   : > { %v1766_v59 = vmul.f32 %v2834_v57, %v1758_v49 }
 0xa94   : > { %v1773_v61 = vmul.f32 %v2505_v58, %v1766_v59 }
 0xa96   : > { %v1780_v62 = vadd.f32 %v2506_v60, %v1773_v61 }
 0xa98   : > { %v1781_v63 = vpack.c.bf16 %v1780_v62, %v1780_v62 }
 0xa9a   : > { %2626 = vmatmul.mubr.msk.bf16.vlgmr.msra.gmra.mrb[20].mxu0 %vm1222_vm1, %v1781_v63 }
 0xb6d   : > { %v1842_v10 = vpop.f32.mrb[20].mxu0 }
 0xb6e   : > { %v1843_v11 = vadd.f32 %v2507_v8, %v1842_v10  ;;  %v2627_v12 = vpop.f32.mrb[21].mxu0 }
 0xb6f   : > { %v1845_v13 = vpop.f32.mrb[22].mxu0 }
 0xb70   : > { %v1849_v14 = vmul.f32 0.044715, %v1843_v11  ;;  %v2628_v15 = vpop.f32.mrb[23].mxu0  ;;  %v1848_v21 = vmul.f32 0.5, %v1843_v11 }
 0xb72   : > { %v1850_v16 = vmul.f32 %v1849_v14, %v1843_v11 }
 0xb74   : > { %v1851_v17 = vmul.f32 %v1850_v16, %v1843_v11 }
 0xb76   : > { %v1852_v18 = vadd.f32 %v1851_v17, %v1843_v11 }
 0xb78   : > { %v1853_v19 = vmul.f32 0.7978846, %v1852_v18 }
 0xb7a   : > { %2835 = vtanh.f32 %v1853_v19 }
 0xb84   : > { %v2836_v20 = vpop.eup %2835 }
 0xb85   : > { %v1855_v22 = vadd.f32 1.0, %v2836_v20 }
 0xb87   : > { %v1856_v23 = vmul.f32 %v1855_v22, %v1848_v21 }
 0xb89   : > { %v1857_v9 = vpack.c.bf16 %v1856_v23, %v1856_v23 }
 0xb8b   : > { %2646 = vmatmul.mubr.bf16.vlgmr.msra.gmra.mrb[12].mxu1 %v1857_v9 }
 0xc5d   : > { %1974 = sbr.rel (%p2520_p9) target bundleno = 3487 (0xd9f), region = 180 }
 0xc5e   : > { %v1963_v25 = vpop.f32.mrb[12].mxu1 }
 0xc5f   : > { %v1964_v26 = vadd.f32 %v2511_v24, %v1963_v25  ;;  %v2647_v27 = vpop.f32.mrb[13].mxu1 }
 0xc60   : > { %v1966_v28 = vpop.f32.mrb[14].mxu1 }
 0xc61   : > { %v1969_v29 = vadd.f32 %v1964_v26, %v4556_v44  ;;  %v2648_v30 = vpop.f32.mrb[15].mxu1 }
 0xc63   : > { %1970 = vst.msk [vmem:[#allocation2] sm:$0xff] %vm1222_vm1, %v1969_v29  ;;  %v1977_v31 = vsel (!%p2520_p9), %vm1222_vm1, %v1969_v29, 0.0 }
 0xc64   : > { %1978 = vadd.xlane.f32.xlu0 %v1977_v31 }
 0xcf1   : > { %v1979_v32 = vpop.xlane.xlu0 %1978 }
 0xcf2   : > { %v1980_v33 = vmul.f32 0.03125, %v1979_v32 }
 0xcf4   : > { %v1981_v34 = vsub.f32 %v1969_v29, %v1980_v33 }
 0xcf6   : > { %v1982_v35 = vmul.f32 %v1981_v34, %v1981_v34 }
 0xcf8   : > { %v1983_v36 = vsel %vm1222_vm1, %v1982_v35, 0.0 }
 0xcf9   : > { %1984 = vadd.xlane.f32.xlu0 %v1983_v36 }
 0xd86   : > { %v1985_v37 = vpop.xlane.xlu0 %1984 }
 0xd87   : > { %v1986_v38 = vmul.f32 0.03125, %v1985_v37 }
 0xd89   : > { %v1987_v39 = vadd.f32 1e-05, %v1986_v38 }
 0xd8b   : > { %2837 = vrsqrt.f32 %v1987_v39 }
 0xd95   : > { %v2838_v40 = vpop.eup %2837 }
 0xd96   : > { %v1989_v42 = vmul.f32 %v2838_v40, %v1981_v34 }
 0xd98   : > { %v1996_v44 = vmul.f32 %v2521_v41, %v1989_v42 }
 0xd9a   : > { %v2003_v45 = vadd.f32 %v2522_v43, %v1996_v44 }
 0xd9c   : > { %v2004_v46 = vpack.c.bf16 %v2003_v45, %v2003_v45 }
 0xd9e   : > { %2006 = vst.msk [vmem:[%s4463_s4] sm:$0xf] %vm2005_vm8, %v2004_v46 }
 0xd9f PF: > { %s4826_s30 = sld [smem:[#allocation50_spill]]  ;;  %s4827_s23 = sld [smem:[#allocation59_spill]] }
 0xda0   : > { %s4828_s27 = sld [smem:[#allocation76_spill]]  ;;  %s2021_s2 = sshll.u32 %s4463_s4, 4  ;;  %s2022_s2 = int_to_ptr.vmem [resolvable:$true] %s2021_s2 }
 0xda1   : > { %s2008_s16 = scalar_lea.sflag [#allocation6], %s4381_s3  ;;  %s3371_s29 = scalar_lea.vmem %s2022_s2, 64 }
 0xda2   : > { %p3372_p2 = scmp.ne.s32.totalorder %s2022_s2, %s3371_s29  ;;  %s3556_s6 = smov [#allocation34]  }
 0xda3   : > { %s3375_s20 = sshll.u32 %s3556_s6, 4  ;;  %s3376_s20 = int_to_ptr.vmem [resolvable:$false] %s3375_s20 }
 0xda4   : > { %s3377_s28 = scalar_lea.vmem %s3376_s20, 128  ;;  %p3378_p11 = scmp.lt.s32.totalorder %s2022_s2, %s3376_s20 }
 0xda5   : > { %s2524_s5 = sshll.u32 %s4826_s30, 6  ;;  %p4829_p12 = scmp.ne.s32.totalorder %s4827_s23, 0 }
 0xda6   : > { %s4601_s8 = scalar_lea.hbm %s4828_s27, %s2524_s5  ;;  %p3379_p6 = scmp.lt.s32.totalorder %s3377_s28, %s3371_s29 }
 0xda7   : > { %p3373_p5 = pnand %p3372_p2, %p4829_p12 }
 0xda8   : > { %p3380_p3 = por %p3379_p6, %p3378_p11 }
 0xda9   : > { %p3374_p0 = pneg %p3373_p5 }
 0xdab   : > { %p3381_p10 = pnand %p3380_p3, %p3374_p0 }
 0xdad   : > { %3384 = shalt.err (!%p3381_p10)
}
 0xdae   : > { %s3385_s3 = scalar_lea.hbm %s4601_s8, 64  ;;  %s3389_s30 = scalar_lea.hbm %s4828_s27, 128 }
 0xdaf   : > { %p3386_p7 = scmp.ne.s32.totalorder %s4601_s8, %s3385_s3  ;;  %p3390_p1 = scmp.lt.u32.totalorder %s4601_s8, %s4828_s27 }
 0xdb0   : > { %p3391_p13 = scmp.lt.u32.totalorder %s3389_s30, %s3385_s3  ;;  %p3393_p2 = scmp.lt.u32.totalorder %s3385_s3, %s4601_s8 }
 0xdb1   : > { %p3387_p8 = pnand %p3386_p7, %p4829_p12 }
 0xdb2   : > { %p3392_p9 = por %p3391_p13, %p3390_p1 }
 0xdb3   : > { %p3388_p4 = pneg %p3387_p8 }
 0xdb4   : > { %p3394_p5 = por %p3393_p2, %p3392_p9 }
 0xdb6   : > { %p3395_p0 = pnand %p3394_p5, %p3388_p4 }
 0xdb8   : > { %3398 = shalt.err (!%p3395_p0)
}
 0xdb9   : > { %2691 = dma.vmem_to_hbm [thread:$0]  (%p4829_p12), %s2022_s2, 64, %s4601_s8, %s2008_s16  }
 0xdba PF: > { %s4830_s19 = sld [smem:[#allocation51_spill]]  ;;  %s4831_s29 = sld [smem:[#allocation48_spill]] }
 0xdbb   : > { %s4832_s6 = sld [smem:[#allocation60_spill]] }
 0xdc0   : > { %p2708_p11 = scmp.ge.s32.totalorder %s4830_s19, 2  ;;  %s2033_s20 = sand.u32 1, %s4831_s29  }
 0xdc1   : > { %p4833_p6 = scmp.ne.s32.totalorder %s4832_s6, 0  ;;  %s2034_s28 = scalar_lea.sflag [#allocation6], %s2033_s20 }
 0xdc3   : > { %p2701_p3 = pnand %p2708_p11, %p4833_p6 }
 0xdc5   : > { %3484 = dma.done.wait (!%p2701_p3), %s2034_s28, 64  }
 0xdc6   : > { %3486 = vsyncadd (!%p2701_p3), %s2034_s28, 4294967232  ;;  %s60_s3 = sadd.s32 1, %s4830_s19   ;;  %s4834_s0 = sld [smem:[#allocation46_spill]] }
 0xdc7   : > { %p57_p10 = scmp.ge.s32.totalorder %s60_s3, 6   ;;  %s4835_s30 = sld [smem:[#allocation47_spill]] }
 0xdc8   : > { %s4836_s20 = sld [smem:[#allocation56_spill]]  ;;  %s4837_s23 = sld [smem:[#allocation57_spill]] }
 0xdc9   : > { %s4838_s8 = sld [smem:[#allocation53_spill]]  ;;  %s4839_s16 = sld [smem:[#allocation54_spill]] }
 0xdca   : > { %s4840_s21 = smov %s3505_s1  ;;  %s4841_s1 = smov %s3509_s22 }
 0xdcb   : > { %s4843_s2 = smov %s3521_s24  ;;  %59 = sbr.rel (!%p57_p10) target bundleno = 43 (0x2b), region = 349 }
 0xdce   : > { %s4842_s22 = smov %s4837_s23  ;;  %s4844_s23 = smov %s3525_s25 }
 0xdcf   : > { %s4845_s24 = smov %s4838_s8  ;;  %s4846_s25 = smov %s4839_s16 }
 0xdd2   :  { %2039 = vsyncpa [#allocation5], 1 }
 0xdd3   :  { %2041 = vsyncpa [#allocation5 + $0x1], 1 }
 0xdd4   :  { %2042 = vsyncpa [#allocation8], 1 }
 0xdd5   :  { %2044 = vsyncpa [#allocation8 + $0x1], 1 }
 0xdd6   :  { %2045 = vsyncpa [#allocation11], 1 }
 0xdd7   :  { %2047 = vsyncpa [#allocation11 + $0x1], 1 }
 0xdd8   :  { %2048 = vsyncpa [#allocation14], 1 }
 0xdd9   :  { %2050 = vsyncpa [#allocation14 + $0x1], 1 }
 0xdda   :  { %2051 = vsyncpa [#allocation17], 1 }
 0xddb   :  { %2053 = vsyncpa [#allocation17 + $0x1], 1 }
 0xddc   :  { %2054 = vsyncpa [#allocation20], 1 }
 0xddd   :  { %2056 = vsyncpa [#allocation20 + $0x1], 1 }
 0xdde   :  { %2057 = vsyncpa [#allocation23], 1 }
 0xddf   :  { %2059 = vsyncpa [#allocation23 + $0x1], 1 }
 0xde0   :  { %2060 = vsyncpa [#allocation26], 1 }
 0xde1   :  { %2062 = vsyncpa [#allocation26 + $0x1], 1 }
 0xde2   :  { %2063 = vsyncpa [#allocation29], 1 }
 0xde3   :  { %2065 = vsyncpa [#allocation29 + $0x1], 1 }
 0xde4   :  { %2066 = vsyncpa [#allocation32], 1 }
 0xde5   :  { %2067 = vsyncpa [#allocation6], 1 }
 0xde6   :  { %2069 = vsyncpa [#allocation6 + $0x1], 1 }

</bundles_post_ra>
